<compile_context>
chip_gen: v7x
topology: tpu7x:2x2x1
jax: 0.10.0
libtpu: 0.0.40
codegen_flags: <defaults>
</compile_context>

<pallas_src>
import functools

import numpy as np
import jax
import jax.numpy as jnp
from jax.experimental import pallas as pl
from jax.experimental.pallas import tpu as pltpu

EPS = 1e-5  # PyTorch BatchNorm2d default eps


def _dw_border_masks(H, W, ks):
    """(ks*ks, 1, H*W) float32 validity masks for the shifted depthwise taps."""
    p = ks // 2
    q = np.arange(H * W)
    h, w = q // W, q % W
    masks = []
    for dh in range(ks):
        for dw in range(ks):
            hh, ww = h + dh - p, w + dw - p
            valid = (hh >= 0) & (hh < H) & (ww >= 0) & (ww < W)
            masks.append(valid.astype(np.float32))
    return np.stack(masks).reshape(ks * ks, 1, H * W)


def _bneck_kernel(ks, nl, use_residual, W,
                  x_ref, w1_ref, g1_ref, be1_ref,
                  wd_ref, m_ref, g2_ref, be2_ref,
                  w3_ref, g3_ref, be3_ref,
                  out_ref):
    N, Cin, HW = x_ref.shape
    p = ks // 2
    inv_cnt = 1.0 / (N * HW)

    if nl == 'HS':
        nlf = lambda v: v * jnp.clip(v + 3.0, 0.0, 6.0) * (1.0 / 6.0)  # Hardswish
    else:
        nlf = lambda v: jnp.maximum(v, 0.0)                            # ReLU

    # Column of ones: turns per-channel BN sums into (otherwise idle) MXU work.
    ones_col = jnp.ones((N, HW, 1), jnp.float32)

    def bn(t, gamma, beta):
        # Training-mode BatchNorm2d, single pass: biased batch statistics per
        # channel over all N*H*W positions.  Row sums go through the MXU
        # (K = H*W), freeing the VPU/XLU slots; var = E[x^2] - E[x]^2.
        s1 = jnp.sum(jnp.einsum('ncp,npk->nck', t, ones_col,
                                preferred_element_type=jnp.float32),
                     axis=0, keepdims=True)
        s2 = jnp.sum(jnp.einsum('ncp,npk->nck', t * t, ones_col,
                                preferred_element_type=jnp.float32),
                     axis=0, keepdims=True)
        mean = s1 * inv_cnt
        var = jnp.maximum(s2 * inv_cnt - mean * mean, 0.0)
        scale = gamma * jax.lax.rsqrt(var + EPS)     # (1, C, 1)
        shift = beta - mean * scale                  # (1, C, 1)
        return t * scale + shift

    x = x_ref[...]                                   # (N, Cin, HW)

    # ---- conv1: 1x1 expand (batched MXU matmul) + BN1 + NL ----------------
    # Conv bias omitted: a per-channel constant is cancelled exactly by the
    # training-mode BN mean subtraction.
    y = jnp.einsum('nec,ncp->nep', w1_ref[...], x,
                   preferred_element_type=jnp.float32)            # (N, E, HW)
    y = nlf(bn(y, g1_ref[...], be1_ref[...]))

    # ---- conv2: depthwise ks x ks, stride 1, padding ks//2 ----------------
    # Each tap is a static pltpu.roll along the flattened spatial (lane) axis
    # (XLU slot) + precomputed border mask; y never leaves vregs.
    wd_all = wd_ref[...]                             # (1, E, ks*ks) -- single load
    m_all = m_ref[...]                               # (ks*ks, 1, HW) -- single load
    acc = None
    for dh in range(ks):
        for dw in range(ks):
            k = dh * ks + dw
            off = (dh - p) * W + (dw - p)
            rolled = y if off == 0 else pltpu.roll(y, (-off) % HW, 2)
            term = rolled * m_all[k] * wd_all[:, :, k:k + 1]
            acc = term if acc is None else acc + term
    z = nlf(bn(acc, g2_ref[...], be2_ref[...]))

    # ---- conv3: 1x1 project (batched MXU matmul) + BN3 --------------------
    o = jnp.einsum('nce,nep->ncp', w3_ref[...], z,
                   preferred_element_type=jnp.float32)            # (N, Cout, HW)
    o = bn(o, g3_ref[...], be3_ref[...])

    if use_residual:
        o = o + x
    out_ref[...] = o                                 # lane-dense (H*W) stores


def bneck_forward(x_nchw, params, *, ks, nl, stride, se=None):
    """x_nchw: (N, Cin, H, W) float32 -> (N, Cout, H, W) float32."""
    assert stride == 1  # TODO(synk): stride=2 depthwise path not implemented (demo config uses s=1).
    assert se is None   # TODO(synk): SEModel is an externally supplied module; None in this config.
    N, Cin, H, W = x_nchw.shape
    (w1, b1, g1, be1, wd, bd, g2, be2, w3, b3, g3, be3) = params
    del b1, bd, b3  # conv biases are exactly cancelled by training-mode BN.
    E = w1.shape[1]
    Cout = w3.shape[1]
    use_residual = (stride == 1 and Cin == Cout)
    HW = H * W
    f32 = jnp.float32

    # Free reshape: NCHW already stores the spatial plane contiguously per channel.
    x3 = x_nchw.reshape(N, Cin, HW).astype(f32)

    # Tiny parameter repacks (negligible): weights pre-transposed so every
    # in-kernel matmul is a plain per-batch (M,K)x(K,N); BN affine as (1,C,1).
    w1b = jnp.broadcast_to(w1.T.astype(f32)[None], (N, E, Cin))
    w3b = jnp.broadcast_to(w3.T.astype(f32)[None], (N, Cout, E))
    wdt = wd.T.astype(f32)[None]                      # (1, E, ks*ks)
    masks = jnp.asarray(_dw_border_masks(H, W, ks))   # (ks*ks, 1, HW)
    g1r, be1r = g1.reshape(1, E, 1).astype(f32), be1.reshape(1, E, 1).astype(f32)
    g2r, be2r = g2.reshape(1, E, 1).astype(f32), be2.reshape(1, E, 1).astype(f32)
    g3r, be3r = g3.reshape(1, Cout, 1).astype(f32), be3.reshape(1, Cout, 1).astype(f32)

    vmem = pl.BlockSpec(memory_space=pltpu.MemorySpace.VMEM)
    kernel = functools.partial(_bneck_kernel, ks, nl, use_residual, W)
    # TODO(synk): for realistic MobileNetV3 shapes (112x112 spatial, E>=64) add
    # a grid over batch / row-bands with pipelined BlockSpecs and a two-pass BN
    # (sum/sumsq accumulated across an 'arbitrary' grid axis); this single
    # invocation is sized for the small demo config and fits VMEM easily.
    out3 = pl.pallas_call(
        kernel,
        out_shape=jax.ShapeDtypeStruct((N, Cout, HW), f32),
        in_specs=[vmem] * 11,
        out_specs=vmem,
    )(x3, w1b, g1r, be1r, wdt, masks, g2r, be2r, w3b, g3r, be3r)

    return out3.reshape(N, Cout, H, W)


def _reference(x_nchw, params, *, ks, nl, stride):
    """Pure-JAX reference of the PyTorch forward (for a sanity check)."""
    (w1, b1, g1, be1, wd, bd, g2, be2, w3, b3, g3, be3) = params
    x = jnp.transpose(x_nchw, (0, 2, 3, 1))
    E = w1.shape[1]

    def bn(y, g, b):
        m = jnp.mean(y, axis=(0, 1, 2), keepdims=True)
        v = jnp.mean(jnp.square(y - m), axis=(0, 1, 2), keepdims=True)
        return (y - m) * jax.lax.rsqrt(v + EPS) * g.reshape(1, 1, 1, -1) + b.reshape(1, 1, 1, -1)

    def nlf(v):
        return v * jnp.clip(v + 3.0, 0.0, 6.0) / 6.0 if nl == 'HS' else jnp.maximum(v, 0.0)

    y = jnp.einsum('nhwc,ce->nhwe', x, w1) + b1.reshape(1, 1, 1, -1)
    y = nlf(bn(y, g1, be1))
    wdep = wd.reshape(ks, ks, 1, E)
    z = jax.lax.conv_general_dilated(
        y, wdep, (stride, stride), 'SAME',
        dimension_numbers=('NHWC', 'HWIO', 'NHWC'), feature_group_count=E)
    z = z + bd.reshape(1, 1, 1, -1)
    z = nlf(bn(z, g2, be2))
    o = jnp.einsum('nhwe,ec->nhwc', z, w3) + b3.reshape(1, 1, 1, -1)
    o = bn(o, g3, be3)
    if stride == 1 and x.shape[-1] == o.shape[-1]:
        o = o + x
    return jnp.transpose(o, (0, 3, 1, 2))


if __name__ == "__main__":
    key = jax.random.PRNGKey(0)
    # bneck(inchannels=8, exp=16, outchannels=8, ks=3, SEModel=None, NL='HS', s=1)
    N, Cin, H, W = 2, 8, 16, 16
    exp, Cout, ks, stride, nl = 16, 8, 3, 1, 'HS'

    keys = jax.random.split(key, 7)
    x = jax.random.normal(keys[0], (N, Cin, H, W), jnp.float32)

    w1 = jax.random.normal(keys[1], (Cin, exp), jnp.float32) * 0.1
    b1 = jax.random.normal(keys[2], (1, exp), jnp.float32) * 0.1
    wd = jax.random.normal(keys[3], (ks * ks, exp), jnp.float32) * 0.1
    bd = jax.random.normal(keys[4], (1, exp), jnp.float32) * 0.1
    w3 = jax.random.normal(keys[5], (exp, Cout), jnp.float32) * 0.1
    b3 = jax.random.normal(keys[6], (1, Cout), jnp.float32) * 0.1
    # BatchNorm affine params: PyTorch defaults (gamma=1, beta=0).
    g1, be1 = jnp.ones((1, exp)), jnp.zeros((1, exp))
    g2, be2 = jnp.ones((1, exp)), jnp.zeros((1, exp))
    g3, be3 = jnp.ones((1, Cout)), jnp.zeros((1, Cout))

    params = (w1, b1, g1, be1, wd, bd, g2, be2, w3, b3, g3, be3)

    out = bneck_forward(x, params, ks=ks, nl=nl, stride=stride)
    out = jax.block_until_ready(out)
    assert out.shape == (N, Cout, H, W)

    ref = _reference(x, params, ks=ks, nl=nl, stride=stride)
    assert jnp.allclose(out, ref, rtol=1e-4, atol=1e-4), float(jnp.max(jnp.abs(out - ref)))

    print("KERNEL_OK")
</pallas_src>

<mosaic_0001>
module attributes {stable_mosaic.version = 11 : i64} {
  func.func @_bneck_kernel(%arg0: memref<2x8x256xf32, #tpu.memory_space<vmem>>, %arg1: memref<2x16x8xf32, #tpu.memory_space<vmem>>, %arg2: memref<1x16x1xf32, #tpu.memory_space<vmem>>, %arg3: memref<1x16x1xf32, #tpu.memory_space<vmem>>, %arg4: memref<1x16x9xf32, #tpu.memory_space<vmem>>, %arg5: memref<9x1x256xf32, #tpu.memory_space<vmem>>, %arg6: memref<1x16x1xf32, #tpu.memory_space<vmem>>, %arg7: memref<1x16x1xf32, #tpu.memory_space<vmem>>, %arg8: memref<2x8x16xf32, #tpu.memory_space<vmem>>, %arg9: memref<1x8x1xf32, #tpu.memory_space<vmem>>, %arg10: memref<1x8x1xf32, #tpu.memory_space<vmem>>, %arg11: memref<2x8x256xf32, #tpu.memory_space<vmem>>) attributes {dimension_semantics = [], scalar_prefetch = 0 : i64, scratch_operands = 0 : i64, tpu.core_type = #tpu.core_type<tc>} {
    %cst = arith.constant 1.000000e+00 : f32
    %0 = vector.broadcast %cst : f32 to vector<2x256x1xf32>
    %c0 = arith.constant 0 : index
    %c0_0 = arith.constant 0 : index
    %c0_1 = arith.constant 0 : index
    %1 = vector.load %arg0[%c0, %c0_0, %c0_1] : memref<2x8x256xf32, #tpu.memory_space<vmem>>, vector<2x8x256xf32>
    %c0_2 = arith.constant 0 : index
    %c0_3 = arith.constant 0 : index
    %c0_4 = arith.constant 0 : index
    %2 = vector.load %arg1[%c0_2, %c0_3, %c0_4] : memref<2x16x8xf32, #tpu.memory_space<vmem>>, vector<2x16x8xf32>
    "tpu.trace_start"() <{level = 10 : i32, message = "nec,ncp->nep"}> : () -> ()
    %cst_5 = arith.constant dense<0.000000e+00> : vector<2x16x256xf32>
    %3 = tpu.matmul %2, %1, %cst_5 {dimension_numbers = #tpu.dot_dimension_numbers<[2], [1], [1], [2], [0, 0, 0, 1, 1, 2], [0], [0]>} : vector<2x16x8xf32>, vector<2x8x256xf32>, vector<2x16x256xf32> -> vector<2x16x256xf32>
    "tpu.trace_stop"() : () -> ()
    %c0_6 = arith.constant 0 : index
    %c0_7 = arith.constant 0 : index
    %c0_8 = arith.constant 0 : index
    %4 = vector.load %arg2[%c0_6, %c0_7, %c0_8] : memref<1x16x1xf32, #tpu.memory_space<vmem>>, vector<1x16x1xf32>
    %c0_9 = arith.constant 0 : index
    %c0_10 = arith.constant 0 : index
    %c0_11 = arith.constant 0 : index
    %5 = vector.load %arg3[%c0_9, %c0_10, %c0_11] : memref<1x16x1xf32, #tpu.memory_space<vmem>>, vector<1x16x1xf32>
    "tpu.trace_start"() <{level = 10 : i32, message = "ncp,npk->nck"}> : () -> ()
    %cst_12 = arith.constant dense<0.000000e+00> : vector<2x16x1xf32>
    %6 = tpu.matmul %3, %0, %cst_12 {dimension_numbers = #tpu.dot_dimension_numbers<[2], [1], [1], [2], [0, 0, 0, 1, 1, 2], [0], [0]>} : vector<2x16x256xf32>, vector<2x256x1xf32>, vector<2x16x1xf32> -> vector<2x16x1xf32>
    "tpu.trace_stop"() : () -> ()
    %cst_13 = arith.constant dense<0.000000e+00> : vector<16x1xf32>
    %7 = vector.multi_reduction <add>, %6, %cst_13 [0] : vector<2x16x1xf32> to vector<16x1xf32>
    %8 = vector.shape_cast %7 : vector<16x1xf32> to vector<1x16x1xf32>
    %9 = arith.mulf %3, %3 : vector<2x16x256xf32>
    "tpu.trace_start"() <{level = 10 : i32, message = "ncp,npk->nck"}> : () -> ()
    %cst_14 = arith.constant dense<0.000000e+00> : vector<2x16x1xf32>
    %10 = tpu.matmul %9, %0, %cst_14 {dimension_numbers = #tpu.dot_dimension_numbers<[2], [1], [1], [2], [0, 0, 0, 1, 1, 2], [0], [0]>} : vector<2x16x256xf32>, vector<2x256x1xf32>, vector<2x16x1xf32> -> vector<2x16x1xf32>
    "tpu.trace_stop"() : () -> ()
    %cst_15 = arith.constant dense<0.000000e+00> : vector<16x1xf32>
    %11 = vector.multi_reduction <add>, %10, %cst_15 [0] : vector<2x16x1xf32> to vector<16x1xf32>
    %12 = vector.shape_cast %11 : vector<16x1xf32> to vector<1x16x1xf32>
    %cst_16 = arith.constant 0.001953125 : f32
    %13 = vector.broadcast %cst_16 : f32 to vector<1x16x1xf32>
    %14 = arith.mulf %8, %13 : vector<1x16x1xf32>
    %cst_17 = arith.constant 0.001953125 : f32
    %15 = vector.broadcast %cst_17 : f32 to vector<1x16x1xf32>
    %16 = arith.mulf %12, %15 : vector<1x16x1xf32>
    %17 = arith.mulf %14, %14 : vector<1x16x1xf32>
    %18 = arith.subf %16, %17 : vector<1x16x1xf32>
    %cst_18 = arith.constant 0.000000e+00 : f32
    %19 = vector.broadcast %cst_18 : f32 to vector<1x16x1xf32>
    %20 = arith.maximumf %18, %19 : vector<1x16x1xf32>
    %cst_19 = arith.constant 9.99999974E-6 : f32
    %21 = vector.broadcast %cst_19 : f32 to vector<1x16x1xf32>
    %22 = arith.addf %20, %21 : vector<1x16x1xf32>
    %23 = math.rsqrt %22 : vector<1x16x1xf32>
    %24 = arith.mulf %4, %23 : vector<1x16x1xf32>
    %25 = arith.mulf %14, %24 : vector<1x16x1xf32>
    %26 = arith.subf %5, %25 : vector<1x16x1xf32>
    %27 = vector.broadcast %24 : vector<1x16x1xf32> to vector<2x16x256xf32>
    %28 = arith.mulf %3, %27 : vector<2x16x256xf32>
    %29 = vector.broadcast %26 : vector<1x16x1xf32> to vector<2x16x256xf32>
    %30 = arith.addf %28, %29 : vector<2x16x256xf32>
    %cst_20 = arith.constant 3.000000e+00 : f32
    %31 = vector.broadcast %cst_20 : f32 to vector<2x16x256xf32>
    %32 = arith.addf %30, %31 : vector<2x16x256xf32>
    %cst_21 = arith.constant 0.000000e+00 : f32
    %cst_22 = arith.constant 6.000000e+00 : f32
    %33 = vector.broadcast %cst_21 : f32 to vector<2x16x256xf32>
    %34 = arith.maximumf %33, %32 : vector<2x16x256xf32>
    %35 = vector.broadcast %cst_22 : f32 to vector<2x16x256xf32>
    %36 = arith.minimumf %35, %34 : vector<2x16x256xf32>
    %37 = arith.mulf %30, %36 : vector<2x16x256xf32>
    %cst_23 = arith.constant 0.166666672 : f32
    %38 = vector.broadcast %cst_23 : f32 to vector<2x16x256xf32>
    %39 = arith.mulf %37, %38 : vector<2x16x256xf32>
    %c0_24 = arith.constant 0 : index
    %c0_25 = arith.constant 0 : index
    %c0_26 = arith.constant 0 : index
    %40 = vector.load %arg4[%c0_24, %c0_25, %c0_26] : memref<1x16x9xf32, #tpu.memory_space<vmem>>, vector<1x16x9xf32>
    %c0_27 = arith.constant 0 : index
    %c0_28 = arith.constant 0 : index
    %c0_29 = arith.constant 0 : index
    %41 = vector.load %arg5[%c0_27, %c0_28, %c0_29] : memref<9x1x256xf32, #tpu.memory_space<vmem>>, vector<9x1x256xf32>
    %c17_i32 = arith.constant 17 : i32
    %42 = tpu.dynamic_rotate %39 by %c17_i32 dim 2 : vector<2x16x256xf32>, i32 -> vector<2x16x256xf32>
    %43 = vector.extract_strided_slice %41 {offsets = [0, 0, 0], sizes = [1, 1, 256], strides = [1, 1, 1]} : vector<9x1x256xf32> to vector<1x1x256xf32>
    %44 = vector.shape_cast %43 : vector<1x1x256xf32> to vector<1x256xf32>
    %45 = vector.shape_cast %44 : vector<1x256xf32> to vector<1x1x256xf32>
    %46 = vector.broadcast %45 : vector<1x1x256xf32> to vector<2x16x256xf32>
    %47 = arith.mulf %42, %46 : vector<2x16x256xf32>
    %48 = vector.extract_strided_slice %40 {offsets = [0, 0, 0], sizes = [1, 16, 1], strides = [1, 1, 1]} : vector<1x16x9xf32> to vector<1x16x1xf32>
    %49 = vector.broadcast %48 : vector<1x16x1xf32> to vector<2x16x256xf32>
    %50 = arith.mulf %47, %49 : vector<2x16x256xf32>
    %c16_i32 = arith.constant 16 : i32
    %51 = tpu.dynamic_rotate %39 by %c16_i32 dim 2 : vector<2x16x256xf32>, i32 -> vector<2x16x256xf32>
    %52 = vector.extract_strided_slice %41 {offsets = [1, 0, 0], sizes = [1, 1, 256], strides = [1, 1, 1]} : vector<9x1x256xf32> to vector<1x1x256xf32>
    %53 = vector.shape_cast %52 : vector<1x1x256xf32> to vector<1x256xf32>
    %54 = vector.shape_cast %53 : vector<1x256xf32> to vector<1x1x256xf32>
    %55 = vector.broadcast %54 : vector<1x1x256xf32> to vector<2x16x256xf32>
    %56 = arith.mulf %51, %55 : vector<2x16x256xf32>
    %57 = vector.extract_strided_slice %40 {offsets = [0, 0, 1], sizes = [1, 16, 1], strides = [1, 1, 1]} : vector<1x16x9xf32> to vector<1x16x1xf32>
    %58 = vector.broadcast %57 : vector<1x16x1xf32> to vector<2x16x256xf32>
    %59 = arith.mulf %56, %58 : vector<2x16x256xf32>
    %60 = arith.addf %50, %59 : vector<2x16x256xf32>
    %c15_i32 = arith.constant 15 : i32
    %61 = tpu.dynamic_rotate %39 by %c15_i32 dim 2 : vector<2x16x256xf32>, i32 -> vector<2x16x256xf32>
    %62 = vector.extract_strided_slice %41 {offsets = [2, 0, 0], sizes = [1, 1, 256], strides = [1, 1, 1]} : vector<9x1x256xf32> to vector<1x1x256xf32>
    %63 = vector.shape_cast %62 : vector<1x1x256xf32> to vector<1x256xf32>
    %64 = vector.shape_cast %63 : vector<1x256xf32> to vector<1x1x256xf32>
    %65 = vector.broadcast %64 : vector<1x1x256xf32> to vector<2x16x256xf32>
    %66 = arith.mulf %61, %65 : vector<2x16x256xf32>
    %67 = vector.extract_strided_slice %40 {offsets = [0, 0, 2], sizes = [1, 16, 1], strides = [1, 1, 1]} : vector<1x16x9xf32> to vector<1x16x1xf32>
    %68 = vector.broadcast %67 : vector<1x16x1xf32> to vector<2x16x256xf32>
    %69 = arith.mulf %66, %68 : vector<2x16x256xf32>
    %70 = arith.addf %60, %69 : vector<2x16x256xf32>
    %c1_i32 = arith.constant 1 : i32
    %71 = tpu.dynamic_rotate %39 by %c1_i32 dim 2 : vector<2x16x256xf32>, i32 -> vector<2x16x256xf32>
    %72 = vector.extract_strided_slice %41 {offsets = [3, 0, 0], sizes = [1, 1, 256], strides = [1, 1, 1]} : vector<9x1x256xf32> to vector<1x1x256xf32>
    %73 = vector.shape_cast %72 : vector<1x1x256xf32> to vector<1x256xf32>
    %74 = vector.shape_cast %73 : vector<1x256xf32> to vector<1x1x256xf32>
    %75 = vector.broadcast %74 : vector<1x1x256xf32> to vector<2x16x256xf32>
    %76 = arith.mulf %71, %75 : vector<2x16x256xf32>
    %77 = vector.extract_strided_slice %40 {offsets = [0, 0, 3], sizes = [1, 16, 1], strides = [1, 1, 1]} : vector<1x16x9xf32> to vector<1x16x1xf32>
    %78 = vector.broadcast %77 : vector<1x16x1xf32> to vector<2x16x256xf32>
    %79 = arith.mulf %76, %78 : vector<2x16x256xf32>
    %80 = arith.addf %70, %79 : vector<2x16x256xf32>
    %81 = vector.extract_strided_slice %41 {offsets = [4, 0, 0], sizes = [1, 1, 256], strides = [1, 1, 1]} : vector<9x1x256xf32> to vector<1x1x256xf32>
    %82 = vector.shape_cast %81 : vector<1x1x256xf32> to vector<1x256xf32>
    %83 = vector.shape_cast %82 : vector<1x256xf32> to vector<1x1x256xf32>
    %84 = vector.broadcast %83 : vector<1x1x256xf32> to vector<2x16x256xf32>
    %85 = arith.mulf %39, %84 : vector<2x16x256xf32>
    %86 = vector.extract_strided_slice %40 {offsets = [0, 0, 4], sizes = [1, 16, 1], strides = [1, 1, 1]} : vector<1x16x9xf32> to vector<1x16x1xf32>
    %87 = vector.broadcast %86 : vector<1x16x1xf32> to vector<2x16x256xf32>
    %88 = arith.mulf %85, %87 : vector<2x16x256xf32>
    %89 = arith.addf %80, %88 : vector<2x16x256xf32>
    %c255_i32 = arith.constant 255 : i32
    %90 = tpu.dynamic_rotate %39 by %c255_i32 dim 2 : vector<2x16x256xf32>, i32 -> vector<2x16x256xf32>
    %91 = vector.extract_strided_slice %41 {offsets = [5, 0, 0], sizes = [1, 1, 256], strides = [1, 1, 1]} : vector<9x1x256xf32> to vector<1x1x256xf32>
    %92 = vector.shape_cast %91 : vector<1x1x256xf32> to vector<1x256xf32>
    %93 = vector.shape_cast %92 : vector<1x256xf32> to vector<1x1x256xf32>
    %94 = vector.broadcast %93 : vector<1x1x256xf32> to vector<2x16x256xf32>
    %95 = arith.mulf %90, %94 : vector<2x16x256xf32>
    %96 = vector.extract_strided_slice %40 {offsets = [0, 0, 5], sizes = [1, 16, 1], strides = [1, 1, 1]} : vector<1x16x9xf32> to vector<1x16x1xf32>
    %97 = vector.broadcast %96 : vector<1x16x1xf32> to vector<2x16x256xf32>
    %98 = arith.mulf %95, %97 : vector<2x16x256xf32>
    %99 = arith.addf %89, %98 : vector<2x16x256xf32>
    %c241_i32 = arith.constant 241 : i32
    %100 = tpu.dynamic_rotate %39 by %c241_i32 dim 2 : vector<2x16x256xf32>, i32 -> vector<2x16x256xf32>
    %101 = vector.extract_strided_slice %41 {offsets = [6, 0, 0], sizes = [1, 1, 256], strides = [1, 1, 1]} : vector<9x1x256xf32> to vector<1x1x256xf32>
    %102 = vector.shape_cast %101 : vector<1x1x256xf32> to vector<1x256xf32>
    %103 = vector.shape_cast %102 : vector<1x256xf32> to vector<1x1x256xf32>
    %104 = vector.broadcast %103 : vector<1x1x256xf32> to vector<2x16x256xf32>
    %105 = arith.mulf %100, %104 : vector<2x16x256xf32>
    %106 = vector.extract_strided_slice %40 {offsets = [0, 0, 6], sizes = [1, 16, 1], strides = [1, 1, 1]} : vector<1x16x9xf32> to vector<1x16x1xf32>
    %107 = vector.broadcast %106 : vector<1x16x1xf32> to vector<2x16x256xf32>
    %108 = arith.mulf %105, %107 : vector<2x16x256xf32>
    %109 = arith.addf %99, %108 : vector<2x16x256xf32>
    %c240_i32 = arith.constant 240 : i32
    %110 = tpu.dynamic_rotate %39 by %c240_i32 dim 2 : vector<2x16x256xf32>, i32 -> vector<2x16x256xf32>
    %111 = vector.extract_strided_slice %41 {offsets = [7, 0, 0], sizes = [1, 1, 256], strides = [1, 1, 1]} : vector<9x1x256xf32> to vector<1x1x256xf32>
    %112 = vector.shape_cast %111 : vector<1x1x256xf32> to vector<1x256xf32>
    %113 = vector.shape_cast %112 : vector<1x256xf32> to vector<1x1x256xf32>
    %114 = vector.broadcast %113 : vector<1x1x256xf32> to vector<2x16x256xf32>
    %115 = arith.mulf %110, %114 : vector<2x16x256xf32>
    %116 = vector.extract_strided_slice %40 {offsets = [0, 0, 7], sizes = [1, 16, 1], strides = [1, 1, 1]} : vector<1x16x9xf32> to vector<1x16x1xf32>
    %117 = vector.broadcast %116 : vector<1x16x1xf32> to vector<2x16x256xf32>
    %118 = arith.mulf %115, %117 : vector<2x16x256xf32>
    %119 = arith.addf %109, %118 : vector<2x16x256xf32>
    %c239_i32 = arith.constant 239 : i32
    %120 = tpu.dynamic_rotate %39 by %c239_i32 dim 2 : vector<2x16x256xf32>, i32 -> vector<2x16x256xf32>
    %121 = vector.extract_strided_slice %41 {offsets = [8, 0, 0], sizes = [1, 1, 256], strides = [1, 1, 1]} : vector<9x1x256xf32> to vector<1x1x256xf32>
    %122 = vector.shape_cast %121 : vector<1x1x256xf32> to vector<1x256xf32>
    %123 = vector.shape_cast %122 : vector<1x256xf32> to vector<1x1x256xf32>
    %124 = vector.broadcast %123 : vector<1x1x256xf32> to vector<2x16x256xf32>
    %125 = arith.mulf %120, %124 : vector<2x16x256xf32>
    %126 = vector.extract_strided_slice %40 {offsets = [0, 0, 8], sizes = [1, 16, 1], strides = [1, 1, 1]} : vector<1x16x9xf32> to vector<1x16x1xf32>
    %127 = vector.broadcast %126 : vector<1x16x1xf32> to vector<2x16x256xf32>
    %128 = arith.mulf %125, %127 : vector<2x16x256xf32>
    %129 = arith.addf %119, %128 : vector<2x16x256xf32>
    %c0_30 = arith.constant 0 : index
    %c0_31 = arith.constant 0 : index
    %c0_32 = arith.constant 0 : index
    %130 = vector.load %arg6[%c0_30, %c0_31, %c0_32] : memref<1x16x1xf32, #tpu.memory_space<vmem>>, vector<1x16x1xf32>
    %c0_33 = arith.constant 0 : index
    %c0_34 = arith.constant 0 : index
    %c0_35 = arith.constant 0 : index
    %131 = vector.load %arg7[%c0_33, %c0_34, %c0_35] : memref<1x16x1xf32, #tpu.memory_space<vmem>>, vector<1x16x1xf32>
    "tpu.trace_start"() <{level = 10 : i32, message = "ncp,npk->nck"}> : () -> ()
    %cst_36 = arith.constant dense<0.000000e+00> : vector<2x16x1xf32>
    %132 = tpu.matmul %129, %0, %cst_36 {dimension_numbers = #tpu.dot_dimension_numbers<[2], [1], [1], [2], [0, 0, 0, 1, 1, 2], [0], [0]>} : vector<2x16x256xf32>, vector<2x256x1xf32>, vector<2x16x1xf32> -> vector<2x16x1xf32>
    "tpu.trace_stop"() : () -> ()
    %cst_37 = arith.constant dense<0.000000e+00> : vector<16x1xf32>
    %133 = vector.multi_reduction <add>, %132, %cst_37 [0] : vector<2x16x1xf32> to vector<16x1xf32>
    %134 = vector.shape_cast %133 : vector<16x1xf32> to vector<1x16x1xf32>
    %135 = arith.mulf %129, %129 : vector<2x16x256xf32>
    "tpu.trace_start"() <{level = 10 : i32, message = "ncp,npk->nck"}> : () -> ()
    %cst_38 = arith.constant dense<0.000000e+00> : vector<2x16x1xf32>
    %136 = tpu.matmul %135, %0, %cst_38 {dimension_numbers = #tpu.dot_dimension_numbers<[2], [1], [1], [2], [0, 0, 0, 1, 1, 2], [0], [0]>} : vector<2x16x256xf32>, vector<2x256x1xf32>, vector<2x16x1xf32> -> vector<2x16x1xf32>
    "tpu.trace_stop"() : () -> ()
    %cst_39 = arith.constant dense<0.000000e+00> : vector<16x1xf32>
    %137 = vector.multi_reduction <add>, %136, %cst_39 [0] : vector<2x16x1xf32> to vector<16x1xf32>
    %138 = vector.shape_cast %137 : vector<16x1xf32> to vector<1x16x1xf32>
    %cst_40 = arith.constant 0.001953125 : f32
    %139 = vector.broadcast %cst_40 : f32 to vector<1x16x1xf32>
    %140 = arith.mulf %134, %139 : vector<1x16x1xf32>
    %cst_41 = arith.constant 0.001953125 : f32
    %141 = vector.broadcast %cst_41 : f32 to vector<1x16x1xf32>
    %142 = arith.mulf %138, %141 : vector<1x16x1xf32>
    %143 = arith.mulf %140, %140 : vector<1x16x1xf32>
    %144 = arith.subf %142, %143 : vector<1x16x1xf32>
    %cst_42 = arith.constant 0.000000e+00 : f32
    %145 = vector.broadcast %cst_42 : f32 to vector<1x16x1xf32>
    %146 = arith.maximumf %144, %145 : vector<1x16x1xf32>
    %cst_43 = arith.constant 9.99999974E-6 : f32
    %147 = vector.broadcast %cst_43 : f32 to vector<1x16x1xf32>
    %148 = arith.addf %146, %147 : vector<1x16x1xf32>
    %149 = math.rsqrt %148 : vector<1x16x1xf32>
    %150 = arith.mulf %130, %149 : vector<1x16x1xf32>
    %151 = arith.mulf %140, %150 : vector<1x16x1xf32>
    %152 = arith.subf %131, %151 : vector<1x16x1xf32>
    %153 = vector.broadcast %150 : vector<1x16x1xf32> to vector<2x16x256xf32>
    %154 = arith.mulf %129, %153 : vector<2x16x256xf32>
    %155 = vector.broadcast %152 : vector<1x16x1xf32> to vector<2x16x256xf32>
    %156 = arith.addf %154, %155 : vector<2x16x256xf32>
    %cst_44 = arith.constant 3.000000e+00 : f32
    %157 = vector.broadcast %cst_44 : f32 to vector<2x16x256xf32>
    %158 = arith.addf %156, %157 : vector<2x16x256xf32>
    %cst_45 = arith.constant 0.000000e+00 : f32
    %cst_46 = arith.constant 6.000000e+00 : f32
    %159 = vector.broadcast %cst_45 : f32 to vector<2x16x256xf32>
    %160 = arith.maximumf %159, %158 : vector<2x16x256xf32>
    %161 = vector.broadcast %cst_46 : f32 to vector<2x16x256xf32>
    %162 = arith.minimumf %161, %160 : vector<2x16x256xf32>
    %163 = arith.mulf %156, %162 : vector<2x16x256xf32>
    %cst_47 = arith.constant 0.166666672 : f32
    %164 = vector.broadcast %cst_47 : f32 to vector<2x16x256xf32>
    %165 = arith.mulf %163, %164 : vector<2x16x256xf32>
    %c0_48 = arith.constant 0 : index
    %c0_49 = arith.constant 0 : index
    %c0_50 = arith.constant 0 : index
    %166 = vector.load %arg8[%c0_48, %c0_49, %c0_50] : memref<2x8x16xf32, #tpu.memory_space<vmem>>, vector<2x8x16xf32>
    "tpu.trace_start"() <{level = 10 : i32, message = "nce,nep->ncp"}> : () -> ()
    %cst_51 = arith.constant dense<0.000000e+00> : vector<2x8x256xf32>
    %167 = tpu.matmul %166, %165, %cst_51 {dimension_numbers = #tpu.dot_dimension_numbers<[2], [1], [1], [2], [0, 0, 0, 1, 1, 2], [0], [0]>} : vector<2x8x16xf32>, vector<2x16x256xf32>, vector<2x8x256xf32> -> vector<2x8x256xf32>
    "tpu.trace_stop"() : () -> ()
    %c0_52 = arith.constant 0 : index
    %c0_53 = arith.constant 0 : index
    %c0_54 = arith.constant 0 : index
    %168 = vector.load %arg9[%c0_52, %c0_53, %c0_54] : memref<1x8x1xf32, #tpu.memory_space<vmem>>, vector<1x8x1xf32>
    %c0_55 = arith.constant 0 : index
    %c0_56 = arith.constant 0 : index
    %c0_57 = arith.constant 0 : index
    %169 = vector.load %arg10[%c0_55, %c0_56, %c0_57] : memref<1x8x1xf32, #tpu.memory_space<vmem>>, vector<1x8x1xf32>
    "tpu.trace_start"() <{level = 10 : i32, message = "ncp,npk->nck"}> : () -> ()
    %cst_58 = arith.constant dense<0.000000e+00> : vector<2x8x1xf32>
    %170 = tpu.matmul %167, %0, %cst_58 {dimension_numbers = #tpu.dot_dimension_numbers<[2], [1], [1], [2], [0, 0, 0, 1, 1, 2], [0], [0]>} : vector<2x8x256xf32>, vector<2x256x1xf32>, vector<2x8x1xf32> -> vector<2x8x1xf32>
    "tpu.trace_stop"() : () -> ()
    %cst_59 = arith.constant dense<0.000000e+00> : vector<8x1xf32>
    %171 = vector.multi_reduction <add>, %170, %cst_59 [0] : vector<2x8x1xf32> to vector<8x1xf32>
    %172 = vector.shape_cast %171 : vector<8x1xf32> to vector<1x8x1xf32>
    %173 = arith.mulf %167, %167 : vector<2x8x256xf32>
    "tpu.trace_start"() <{level = 10 : i32, message = "ncp,npk->nck"}> : () -> ()
    %cst_60 = arith.constant dense<0.000000e+00> : vector<2x8x1xf32>
    %174 = tpu.matmul %173, %0, %cst_60 {dimension_numbers = #tpu.dot_dimension_numbers<[2], [1], [1], [2], [0, 0, 0, 1, 1, 2], [0], [0]>} : vector<2x8x256xf32>, vector<2x256x1xf32>, vector<2x8x1xf32> -> vector<2x8x1xf32>
    "tpu.trace_stop"() : () -> ()
    %cst_61 = arith.constant dense<0.000000e+00> : vector<8x1xf32>
    %175 = vector.multi_reduction <add>, %174, %cst_61 [0] : vector<2x8x1xf32> to vector<8x1xf32>
    %176 = vector.shape_cast %175 : vector<8x1xf32> to vector<1x8x1xf32>
    %cst_62 = arith.constant 0.001953125 : f32
    %177 = vector.broadcast %cst_62 : f32 to vector<1x8x1xf32>
    %178 = arith.mulf %172, %177 : vector<1x8x1xf32>
    %cst_63 = arith.constant 0.001953125 : f32
    %179 = vector.broadcast %cst_63 : f32 to vector<1x8x1xf32>
    %180 = arith.mulf %176, %179 : vector<1x8x1xf32>
    %181 = arith.mulf %178, %178 : vector<1x8x1xf32>
    %182 = arith.subf %180, %181 : vector<1x8x1xf32>
    %cst_64 = arith.constant 0.000000e+00 : f32
    %183 = vector.broadcast %cst_64 : f32 to vector<1x8x1xf32>
    %184 = arith.maximumf %182, %183 : vector<1x8x1xf32>
    %cst_65 = arith.constant 9.99999974E-6 : f32
    %185 = vector.broadcast %cst_65 : f32 to vector<1x8x1xf32>
    %186 = arith.addf %184, %185 : vector<1x8x1xf32>
    %187 = math.rsqrt %186 : vector<1x8x1xf32>
    %188 = arith.mulf %168, %187 : vector<1x8x1xf32>
    %189 = arith.mulf %178, %188 : vector<1x8x1xf32>
    %190 = arith.subf %169, %189 : vector<1x8x1xf32>
    %191 = vector.broadcast %188 : vector<1x8x1xf32> to vector<2x8x256xf32>
    %192 = arith.mulf %167, %191 : vector<2x8x256xf32>
    %193 = vector.broadcast %190 : vector<1x8x1xf32> to vector<2x8x256xf32>
    %194 = arith.addf %192, %193 : vector<2x8x256xf32>
    %195 = arith.addf %194, %1 : vector<2x8x256xf32>
    %c0_66 = arith.constant 0 : index
    %c0_67 = arith.constant 0 : index
    %c0_68 = arith.constant 0 : index
    %196 = vector.load %arg11[%c0_66, %c0_67, %c0_68] : memref<2x8x256xf32, #tpu.memory_space<vmem>>, vector<2x8x256xf32>
    tpu.vector_store %arg11[%c0_66, %c0_67, %c0_68], %195 {strides = array<i32>} : memref<2x8x256xf32, #tpu.memory_space<vmem>>, vector<2x8x256xf32>,
    return
  }
}

</mosaic_0001>

<bundles_post_ra>
// kernel: tpu_custom_call.1
= control target key start
LH: loop header
LB: loop body
LE: loop exit
PB: predicated region body
PF: predicated region fallthrough
CT: control target
= control target key end

     0   :  { %vm47_vm0 = vcmask 64512   ;;  %v4095_v6 = vmov 0.0   ;;  %s4083_s0 = inlined_call_operand.vmem [shape: f32[2,8,256], index: 0, kind: input, shape index: {}]   ;;  %s4084_s1 = inlined_call_operand.vmem [shape: f32[2,16,8], index: 1, kind: input, shape index: {}]   ;;  %s4085_s2 = inlined_call_operand.vmem [shape: f32[1,16,1], index: 2, kind: input, shape index: {}]   ;;  %s4086_s3 = inlined_call_operand.vmem [shape: f32[1,16,1], index: 3, kind: input, shape index: {}]   ;;  %s4087_s4 = inlined_call_operand.vmem [shape: f32[1,16,9], index: 4, kind: input, shape index: {}]   ;;  %s4088_s5 = inlined_call_operand.vmem [shape: f32[9,1,256], index: 5, kind: input, shape index: {}]   ;;  %s4089_s6 = inlined_call_operand.vmem [shape: f32[1,16,1], index: 6, kind: input, shape index: {}]   ;;  %s4090_s7 = inlined_call_operand.vmem [shape: f32[1,16,1], index: 7, kind: input, shape index: {}]   ;;  %s4091_s8 = inlined_call_operand.vmem [shape: f32[2,8,16], index: 8, kind: input, shape index: {}]   ;;  %s4092_s9 = inlined_call_operand.vmem [shape: f32[1,8,1], index: 9, kind: input, shape index: {}]   ;;  %s4093_s10 = inlined_call_operand.vmem [shape: f32[1,8,1], index: 10, kind: input, shape index: {}]   ;;  %s4094_s11 = inlined_call_operand.hbm [shape: f32[2,8,256], index: 11, kind: output, shape index: {}]  }
   0x1   :  { %v40_v0 = vld [vmem:[%s4083_s0 + $0x8] sm:$0xff]  ;;  %v42_v1 = vld [vmem:[%s4083_s0 + $0x18] sm:$0xff]  ;;  %v39_v2 = vld [vmem:[%s4083_s0] sm:$0xff]  ;;  %118 = vmatprep.mubr.f32.mxu0 %v4095_v6 }
   0x2   :  { %54 = vmatprep.subr.mxu0 %v40_v0  ;;  %137 = vmatprep.subr.mxu1 %v42_v1  ;;  %v41_v3 = vld [vmem:[%s4083_s0 + $0x10] sm:$0xff]  ;;  %v43_v4 = vld [vmem:[%s4084_s1] sm:$0xff] }
   0x3   :  { %v45_v5 = vld [vmem:[%s4084_s1 + $0x10] sm:$0xff]  ;;  %55 = vmatpush1.msra.mxu0 %v39_v2 }
   0x4   :  { %16 = vsyncpa [#allocation3], 0  ;;  %138 = vmatpush1.msra.mxu1 %v41_v3  ;;  %201 = vmatprep.mubr.f32.mxu1 %v4095_v6  ;;  %v44_v7 = vld [vmem:[%s4084_s1 + $0x8] sm:$0xff]  ;;  %v46_v8 = vld [vmem:[%s4084_s1 + $0x18] sm:$0xff]  ;;  %v4097_v9 = vmov 1.0|1.0  }
   0x5   :  { %2144 = vmatmul.mubr.msk.f32.vlgmr.msra.gmra.mrb[0].mxu0 %vm47_vm0, %v43_v4  ;;  %2146 = vmatmul.mubr.msk.f32.vlgmr.msra.gmra.mrb[0].mxu1 %vm47_vm0, %v45_v5  ;;  %v3123_v26 = vld [vmem:[%s4087_s4] sm:$0xff]  ;;  %v2871_v27 = vmov 2   ;;  %v2872_v28 = vmov 1   ;;  %v2873_v29 = vmov 8   ;;  %v2874_v30 = vmov 3   ;;  %v3133_v31 = vld [vmem:[%s4087_s4 + $0x8] sm:$0xff] }
   0x6   :  { %124 = vmatprep.mubr.f32.mxu0 %v4095_v6  ;;  %207 = vmatprep.mubr.f32.mxu1 %v4095_v6  ;;  %v2875_v32 = vmov 6   ;;  %v2876_v33 = vmov 4   ;;  %v2877_v34 = vmov 7   ;;  %v2878_v35 = vmov 5   ;;  %s2882_s24 = smov 15   ;;  %s2883_s25 = smov 1  }
   0x7   :  { %2594 = vmatprep.subr.bf16.mxu0 %v4097_v9  ;;  %2610 = vmatprep.subr.bf16.mxu1 %v4097_v9  ;;  %v2879_v36 = vmov 0   ;;  %vm368_vm1 = vcmask 7168   ;;  %s2884_s26 = smov 127   ;;  %s2885_s27 = smov 113   ;;  %vm1651_vm10 = vcmask 130048  }
   0x8   :  { %2595 = vmatpush3.bf16.msra.mxu0 %v4097_v9  ;;  %2611 = vmatpush3.bf16.msra.mxu1 %v4097_v9  ;;  %s2886_s28 = smov 112   ;;  %s2887_s29 = smov 111  }
   0x9   :  { %2145 = vmatmul.mubr.msk.f32.gmra.mrb[2].mxu0 %vm47_vm0, %v44_v7  ;;  %2147 = vmatmul.mubr.msk.f32.gmra.mrb[2].mxu1 %vm47_vm0, %v46_v8 }
   0xa   :  { %2596 = vmatprep.subr.bf16.mxu0 %v4097_v9  ;;  %2612 = vmatprep.subr.bf16.mxu1 %v4097_v9 }
   0xb   :  { %2816 = vset.pattern.permute.xlu0 %v2871_v27  ;;  %2815 = vset.pattern.permute.xlu1 %v2872_v28 }
   0xc   :  { %2597 = vmatpush3.bf16.msra.mxu0 %v4097_v9  ;;  %2613 = vmatpush3.bf16.msra.mxu1 %v4097_v9 }
   0xd   :  { %2598 = vmatprep.subr.bf16.mxu0 %v4097_v9  ;;  %2614 = vmatprep.subr.bf16.mxu1 %v4097_v9 }
   0xe   :  { %823 = vperm.xlu0 %2816, %v3123_v26   ;;  %755 = vperm.xlu1 %2815, %v3123_v26  }
  0x10   :  { %2599 = vmatpush3.bf16.msra.mxu0 %v4097_v9  ;;  %2615 = vmatpush3.bf16.msra.mxu1 %v4097_v9 }
  0x11   :  { %2600 = vmatprep.subr.bf16.mxu0 %v4097_v9  ;;  %2616 = vmatprep.subr.bf16.mxu1 %v4097_v9 }
  0x12   :  { %2819 = vset.pattern.permute.xlu0 %v2873_v29  ;;  %2817 = vset.pattern.permute.xlu1 %v2875_v32 }
  0x13   :  { %1206 = vperm.xlu0 %2819, %v3123_v26   ;;  %1070 = vperm.xlu1 %2817, %v3123_v26  }
  0x14   :  { %2601 = vmatpush3.bf16.msra.mxu0 %v4097_v9  ;;  %2617 = vmatpush3.bf16.msra.mxu1 %v4097_v9 }
  0x15   :  { %2602 = vmatprep.subr.bf16.mxu0 %v4097_v9  ;;  %2618 = vmatprep.subr.bf16.mxu1 %v4097_v9 }
  0x17   :  { %2820 = vset.pattern.permute.xlu0 %v2874_v30  ;;  %2818 = vset.pattern.permute.xlu1 %v2877_v34 }
  0x18   :  { %2603 = vmatpush3.bf16.msra.mxu0 %v4097_v9  ;;  %2619 = vmatpush3.bf16.msra.mxu1 %v4097_v9 }
  0x19   :  { %2604 = vmatprep.subr.bf16.mxu0 %v4097_v9  ;;  %2620 = vmatprep.subr.bf16.mxu1 %v4097_v9 }
  0x1a   :  { %891 = vperm.xlu0 %2820, %v3123_v26   ;;  %1138 = vperm.xlu1 %2818, %v3123_v26  }
  0x1c   :  { %2605 = vmatpush3.bf16.msra.mxu0 %v4097_v9  ;;  %2621 = vmatpush3.bf16.msra.mxu1 %v4097_v9 }
  0x1d   :  { %2606 = vmatprep.subr.bf16.mxu0 %v4097_v9  ;;  %2622 = vmatprep.subr.bf16.mxu1 %v4097_v9 }
  0x1e   :  { %895 = vperm.xlu0 %2820, %v3133_v31   ;;  %2821 = vset.pattern.permute.xlu1 %v2872_v28 }
  0x1f   :  { %759 = vperm.xlu1 %2821, %v3133_v31  }
  0x20   :  { %2607 = vmatpush3.bf16.msra.mxu0 %v4097_v9  ;;  %2623 = vmatpush3.bf16.msra.mxu1 %v4097_v9 }
  0x21   :  { %2608 = vmatprep.subr.bf16.mxu0 %v4097_v9  ;;  %2624 = vmatprep.subr.bf16.mxu1 %v4097_v9 }
  0x22   :  { %2823 = vset.pattern.permute.xlu0 %v2876_v33 }
  0x23   :  { %934 = vperm.xlu0 %2823, %v3123_v26   ;;  %2822 = vset.pattern.permute.xlu1 %v2871_v27 }
  0x24   :  { %2609 = vmatpush3.bf16.msra.mxu0 %v4097_v9  ;;  %2625 = vmatpush3.bf16.msra.mxu1 %v4097_v9 }
  0x25   :  { %2626 = vmatprep.subr.bf16.mxu0 %v4097_v9  ;;  %2642 = vmatprep.subr.bf16.mxu1 %v4097_v9 }
  0x26   :  { %827 = vperm.xlu1 %2822, %v3133_v31  }
  0x27   :  { %938 = vperm.xlu0 %2823, %v3133_v31  }
  0x2a   :  { %2825 = vset.pattern.permute.xlu1 %v2875_v32 }
  0x2b   :  { %2824 = vset.pattern.permute.xlu0 %v2878_v35  ;;  %1074 = vperm.xlu1 %2825, %v3133_v31  }
  0x2c   :  { %1002 = vperm.xlu0 %2824, %v3123_v26  }
  0x2f   :  { %2826 = vset.pattern.permute.xlu1 %v2877_v34  ;;  %v214_v34 = vld [vmem:[%s4085_s2] sm:$0xff] }
  0x30   :  { %1006 = vperm.xlu0 %2824, %v3133_v31   ;;  %1142 = vperm.xlu1 %2826, %v3133_v31  }
  0x34   :  { %2827 = vset.pattern.permute.xlu0 %v2879_v36  ;;  %2830 = vset.pattern.permute.xlu1 %v2879_v36 }
  0xd8   :  { %v3016_v10 = vpop.f32.mrb[0].mxu0  ;;  %v3018_v11 = vpop.f32.mrb[0].mxu1 }
  0xd9   :  { %v3020_v12 = vpop.f32.mrb[1].mxu0  ;;  %v3022_v13 = vpop.f32.mrb[1].mxu1  ;;  %v375_v20 = vmul.f32 %v3016_v10, %v3016_v10  ;;  %v379_v21 = vmul.f32 %v3018_v11, %v3018_v11 }
  0xda   :  { %282 = vmatprep.mubr.f32.mxu0 %v3020_v12  ;;  %357 = vmatprep.mubr.f32.mxu1 %v3022_v13  ;;  %v376_v18 = vmul.f32 %v3020_v12, %v3020_v12  ;;  %v380_v19 = vmul.f32 %v3022_v13, %v3022_v13 }
  0xdb   :  { %283 = vmatmul.mubr.f32.vlgmr.msra.gmra.mrb[4].mxu0 %v3016_v10  ;;  %358 = vmatmul.mubr.f32.vlgmr.msra.gmra.mrb[4].mxu1 %v3018_v11 }
  0xdc   :  { %2627 = vmatpush3.bf16.msra.mxu0 %v4097_v9  ;;  %2643 = vmatpush3.bf16.msra.mxu1 %v4097_v9  ;;  %v3030_v14 = vpop.f32.mrb[2].mxu0  ;;  %v3032_v15 = vpop.f32.mrb[2].mxu1 }
  0xdd   :  { %v3034_v16 = vpop.f32.mrb[3].mxu0  ;;  %v3036_v17 = vpop.f32.mrb[3].mxu1  ;;  %2628 = vmatprep.subr.bf16.mxu0 %v4097_v9  ;;  %2644 = vmatprep.subr.bf16.mxu1 %v4097_v9  ;;  %v377_v24 = vmul.f32 %v3030_v14, %v3030_v14  ;;  %v381_v25 = vmul.f32 %v3032_v15, %v3032_v15 }
  0xde   :  { %287 = vmatprep.mubr.f32.mxu0 %v3034_v16  ;;  %362 = vmatprep.mubr.f32.mxu1 %v3036_v17  ;;  %v378_v22 = vmul.f32 %v3034_v16, %v3034_v16  ;;  %v382_v23 = vmul.f32 %v3036_v17, %v3036_v17 }
  0xdf   :  { %288 = vmatmul.mubr.f32.gmra.mrb[6].mxu0 %v3030_v14  ;;  %363 = vmatmul.mubr.f32.gmra.mrb[6].mxu1 %v3032_v15 }
  0xe0   :  { %2629 = vmatpush3.bf16.msra.mxu0 %v4097_v9  ;;  %2645 = vmatpush3.bf16.msra.mxu1 %v4097_v9 }
  0xe1   :  { %447 = vmatprep.mubr.f32.mxu0 %v376_v18  ;;  %522 = vmatprep.mubr.f32.mxu1 %v380_v19 }
  0xe2   :  { %2630 = vmatprep.subr.bf16.mxu0 %v4097_v9  ;;  %2646 = vmatprep.subr.bf16.mxu1 %v4097_v9 }
  0xe4   :  { %2631 = vmatpush3.bf16.msra.mxu0 %v4097_v9  ;;  %2647 = vmatpush3.bf16.msra.mxu1 %v4097_v9 }
  0xe5   :  { %2632 = vmatprep.subr.bf16.mxu0 %v4097_v9  ;;  %2648 = vmatprep.subr.bf16.mxu1 %v4097_v9 }
  0xe8   :  { %2633 = vmatpush3.bf16.msra.mxu0 %v4097_v9  ;;  %2649 = vmatpush3.bf16.msra.mxu1 %v4097_v9 }
  0xe9   :  { %2634 = vmatprep.subr.bf16.mxu0 %v4097_v9  ;;  %2650 = vmatprep.subr.bf16.mxu1 %v4097_v9 }
  0xec   :  { %2635 = vmatpush3.bf16.msra.mxu0 %v4097_v9  ;;  %2651 = vmatpush3.bf16.msra.mxu1 %v4097_v9 }
  0xed   :  { %2636 = vmatprep.subr.bf16.mxu0 %v4097_v9  ;;  %2652 = vmatprep.subr.bf16.mxu1 %v4097_v9 }
  0xf0   :  { %2637 = vmatpush3.bf16.msra.mxu0 %v4097_v9  ;;  %2653 = vmatpush3.bf16.msra.mxu1 %v4097_v9 }
  0xf1   :  { %2638 = vmatprep.subr.bf16.mxu0 %v4097_v9  ;;  %2654 = vmatprep.subr.bf16.mxu1 %v4097_v9 }
  0xf4   :  { %2639 = vmatpush3.bf16.msra.mxu0 %v4097_v9  ;;  %2655 = vmatpush3.bf16.msra.mxu1 %v4097_v9 }
  0xf5   :  { %2640 = vmatprep.subr.bf16.mxu0 %v4097_v9  ;;  %2656 = vmatprep.subr.bf16.mxu1 %v4097_v9 }
  0xf8   :  { %2641 = vmatpush3.bf16.msra.mxu0 %v4097_v9  ;;  %2657 = vmatpush3.bf16.msra.mxu1 %v4097_v9 }
  0xf9   :  { %2658 = vmatprep.subr.bf16.mxu0 %v4097_v9  ;;  %2674 = vmatprep.subr.bf16.mxu1 %v4097_v9 }
  0xfb   :  { %448 = vmatmul.mubr.f32.vlgmr.msra.gmra.mrb[8].mxu0 %v375_v20  ;;  %523 = vmatmul.mubr.f32.vlgmr.msra.gmra.mrb[8].mxu1 %v379_v21 }
  0xfc   :  { %452 = vmatprep.mubr.f32.mxu0 %v378_v22  ;;  %527 = vmatprep.mubr.f32.mxu1 %v382_v23 }
  0xfd   :  { %2659 = vmatpush3.bf16.msra.mxu0 %v4097_v9  ;;  %2675 = vmatpush3.bf16.msra.mxu1 %v4097_v9 }
  0xfe   :  { %2660 = vmatprep.subr.bf16.mxu0 %v4097_v9  ;;  %2676 = vmatprep.subr.bf16.mxu1 %v4097_v9 }
  0xff   :  { %453 = vmatmul.mubr.f32.gmra.mrb[10].mxu0 %v377_v24  ;;  %528 = vmatmul.mubr.f32.gmra.mrb[10].mxu1 %v381_v25 }
 0x101   :  { %2661 = vmatpush3.bf16.msra.mxu0 %v4097_v9  ;;  %2677 = vmatpush3.bf16.msra.mxu1 %v4097_v9 }
 0x102   :  { %2662 = vmatprep.subr.bf16.mxu0 %v4097_v9  ;;  %2678 = vmatprep.subr.bf16.mxu1 %v4097_v9 }
 0x105   :  { %2663 = vmatpush3.bf16.msra.mxu0 %v4097_v9  ;;  %2679 = vmatpush3.bf16.msra.mxu1 %v4097_v9 }
 0x106   :  { %2664 = vmatprep.subr.bf16.mxu0 %v4097_v9  ;;  %2680 = vmatprep.subr.bf16.mxu1 %v4097_v9 }
 0x109   :  { %2665 = vmatpush3.bf16.msra.mxu0 %v4097_v9  ;;  %2681 = vmatpush3.bf16.msra.mxu1 %v4097_v9 }
 0x10a   :  { %2666 = vmatprep.subr.bf16.mxu0 %v4097_v9  ;;  %2682 = vmatprep.subr.bf16.mxu1 %v4097_v9 }
 0x10d   :  { %2667 = vmatpush3.bf16.msra.mxu0 %v4097_v9  ;;  %2683 = vmatpush3.bf16.msra.mxu1 %v4097_v9 }
 0x10e   :  { %2668 = vmatprep.subr.bf16.mxu0 %v4097_v9  ;;  %2684 = vmatprep.subr.bf16.mxu1 %v4097_v9 }
 0x111   :  { %2669 = vmatpush3.bf16.msra.mxu0 %v4097_v9  ;;  %2685 = vmatpush3.bf16.msra.mxu1 %v4097_v9 }
 0x112   :  { %2670 = vmatprep.subr.bf16.mxu0 %v4097_v9  ;;  %2686 = vmatprep.subr.bf16.mxu1 %v4097_v9 }
 0x115   :  { %2671 = vmatpush3.bf16.msra.mxu0 %v4097_v9  ;;  %2687 = vmatpush3.bf16.msra.mxu1 %v4097_v9 }
 0x116   :  { %2672 = vmatprep.subr.bf16.mxu0 %v4097_v9  ;;  %2688 = vmatprep.subr.bf16.mxu1 %v4097_v9 }
 0x119   :  { %2673 = vmatpush3.bf16.msra.mxu0 %v4097_v9  ;;  %2689 = vmatpush3.bf16.msra.mxu1 %v4097_v9 }
 0x11a   :  { %2690 = vmatprep.subr.bf16.mxu0 %v4097_v9  ;;  %2706 = vmatprep.subr.bf16.mxu1 %v4097_v9 }
 0x1ae   :  { %v2182_v37 = vpop.f32.mrb[4].mxu0  ;;  %v2220_v38 = vpop.f32.mrb[4].mxu1 }
 0x1af   :  { %v2183_v39 = vpop.f32.mrb[5].mxu0  ;;  %v2221_v40 = vpop.f32.mrb[5].mxu1 }
 0x1b0   :  { %v2184_v41 = vadd.f32 %v2183_v39, %v2182_v37  ;;  %v2222_v42 = vadd.f32 %v2221_v40, %v2220_v38  ;;  %v215_v38 = vld [vmem:[%s4085_s2 + $0x8] sm:$0xff]  ;;  %v216_v39 = vld [vmem:[%s4086_s3] sm:$0xff]  ;;  %s2880_s2 = smov 17  }
 0x1b2   :  { %v369_v43 = vsel %vm368_vm1, %v2184_v41, 0.0  ;;  %v370_v44 = vsel %vm368_vm1, %v2222_v42, 0.0  ;;  %v2185_v45 = vpop.f32.mrb[6].mxu0  ;;  %v2223_v46 = vpop.f32.mrb[6].mxu1 }
 0x1b3   :  { %v371_v47 = vadd.f32 %v370_v44, %v369_v43  ;;  %v2186_v48 = vpop.f32.mrb[7].mxu0  ;;  %v2224_v49 = vpop.f32.mrb[7].mxu1  ;;  %v217_v44 = vld [vmem:[%s4086_s3 + $0x8] sm:$0xff]  ;;  %s2881_s3 = smov 16  }
 0x1b4   :  { %v2187_v50 = vadd.f32 %v2186_v48, %v2185_v45  ;;  %v2225_v51 = vadd.f32 %v2224_v49, %v2223_v46 }
 0x1b5   :  { %v539_v61 = vmul.f32 0.001953125, %v371_v47  ;;  %v3173_v47 = vpop.permute.xlu0 %823 }
 0x1b6   :  { %v372_v52 = vsel %vm368_vm1, %v2187_v50, 0.0  ;;  %v373_v53 = vsel %vm368_vm1, %v2225_v51, 0.0 }
 0x1b7   :  { %v374_v54 = vadd.f32 %v373_v53, %v372_v52  ;;  %v543_v8 = vmul.f32 %v539_v61, %v539_v61  ;;  %v3187_v53 = vpop.permute.xlu1 %755 }
 0x1b9   :  { %v540_v18 = vmul.f32 0.001953125, %v374_v54  ;;  %v3175_v48 = vpop.permute.xlu0 %1206 }
 0x1bb   :  { %v544_v24 = vmul.f32 %v540_v18, %v540_v18 }
 0x1bd   :  { %v3177_v49 = vpop.permute.xlu0 %891 }
 0x1c1   :  { %v3179_v50 = vpop.permute.xlu0 %895 }
 0x1c2   :  { %4113 = vst [vmem:[#allocation5_spill] sm:$0xff] %v3179_v50 }
 0x1c5   :  { %v3181_v51 = vpop.permute.xlu0 %934 }
 0x1c9   :  { %v3183_v52 = vpop.permute.xlu0 %938 }
 0x1ca   :  { %4114 = vst [vmem:[#allocation6_spill] sm:$0xff] %v3183_v52 }
 0x1ce   :  { %v2258_v55 = vpop.f32.mrb[8].mxu0  ;;  %v2296_v56 = vpop.f32.mrb[8].mxu1 }
 0x1cf   :  { %v2259_v57 = vpop.f32.mrb[9].mxu0  ;;  %v2297_v58 = vpop.f32.mrb[9].mxu1 }
 0x1d0   :  { %v2260_v59 = vadd.f32 %v2259_v57, %v2258_v55  ;;  %v2298_v60 = vadd.f32 %v2297_v58, %v2296_v56 }
 0x1d2   :  { %v533_v62 = vsel %vm368_vm1, %v2260_v59, 0.0  ;;  %v534_v63 = vsel %vm368_vm1, %v2298_v60, 0.0  ;;  %v2261_v0 = vpop.f32.mrb[10].mxu0  ;;  %v2299_v1 = vpop.f32.mrb[10].mxu1 }
 0x1d3   :  { %v535_v2 = vadd.f32 %v534_v63, %v533_v62  ;;  %v2262_v3 = vpop.f32.mrb[11].mxu0  ;;  %v2300_v4 = vpop.f32.mrb[11].mxu1 }
 0x1d4   :  { %v2263_v5 = vadd.f32 %v2262_v3, %v2261_v0  ;;  %v2301_v7 = vadd.f32 %v2300_v4, %v2299_v1 }
 0x1d5   :  { %v541_v19 = vmul.f32 0.001953125, %v535_v2 }
 0x1d6   :  { %v536_v20 = vsel %vm368_vm1, %v2263_v5, 0.0  ;;  %v537_v21 = vsel %vm368_vm1, %v2301_v7, 0.0 }
 0x1d7   :  { %v545_v22 = vsub.f32 %v541_v19, %v543_v8  ;;  %v538_v23 = vadd.f32 %v537_v21, %v536_v20 }
 0x1d9   :  { %v547_v25 = vmax.f32 %v545_v22, 0.0  ;;  %v542_v27 = vmul.f32 0.001953125, %v538_v23 }
 0x1db   :  { %v549_v28 = vadd.f32 1e-05, %v547_v25  ;;  %v546_v30 = vsub.f32 %v542_v27, %v544_v24 }
 0x1dd   :  { %2831 = vrsqrt.f32 %v549_v28  ;;  %v548_v32 = vmax.f32 %v546_v30, 0.0 }
 0x1df   :  { %v550_v33 = vadd.f32 1e-05, %v548_v32 }
 0x1e1   :  { %2833 = vrsqrt.f32 %v550_v33 }
 0x1e7   :  { %v2832_v35 = vpop.eup %2831 }
 0x1e8   :  { %v553_v37 = vmul.f32 %v2832_v35, %v214_v34 }
 0x1ea   :  { %561 = vperm.xlu0 %2827, %v553_v37   ;;  %v555_v40 = vmul.f32 %v553_v37, %v539_v61 }
 0x1eb   :  { %v2834_v41 = vpop.eup %2833 }
 0x1ec   :  { %v554_v42 = vmul.f32 %v2834_v41, %v215_v38  ;;  %v557_v43 = vsub.f32 %v216_v39, %v555_v40 }
 0x1ee   :  { %566 = vperm.xlu1 %2830, %v554_v42   ;;  %579 = vperm.xlu0 %2827, %v557_v43   ;;  %v556_v45 = vmul.f32 %v554_v42, %v540_v18 }
 0x1f0   :  { %v558_v46 = vsub.f32 %v217_v44, %v556_v45 }
 0x1f2   :  { %584 = vperm.xlu1 %2830, %v558_v46   ;;  %2828 = vset.pattern.permute.xlu0 %v2873_v29  ;;  %v3185_v29 = vpop.permute.xlu0 %1002 }
 0x1f3   :  { %1210 = vperm.xlu0 %2828, %v3133_v31  }
 0x1f7   :  { %2829 = vset.pattern.permute.xlu0 %v2879_v36  ;;  %v3189_v36 = vpop.permute.xlu0 %1006 }
 0x1f8   :  { %694 = vperm.xlu0 %2829, %v3123_v26   ;;  %4115 = vst [vmem:[#allocation7_spill] sm:$0xff] %v3189_v36  ;;  %v3191_v26 = vpop.permute.xlu1 %1070 }
 0x1fc   :  { %699 = vperm.xlu0 %2829, %v3133_v31   ;;  %v3197_v59 = vpop.permute.xlu1 %1138 }
 0x200   :  { %v3199_v7 = vpop.permute.xlu1 %759 }
 0x201   :  { %4116 = vst [vmem:[#allocation8_spill] sm:$0xff] %v3199_v7 }
 0x204   :  { %v3205_v24 = vpop.permute.xlu1 %827 }
 0x205   :  { %4117 = vst [vmem:[#allocation9_spill] sm:$0xff] %v3205_v24 }
 0x208   :  { %v3217_v28 = vpop.permute.xlu1 %1074 }
 0x209   :  { %4118 = vst [vmem:[#allocation10_spill] sm:$0xff] %v3217_v28 }
 0x20c   :  { %v3225_v32 = vpop.permute.xlu1 %1142 }
 0x20d   :  { %4119 = vst [vmem:[#allocation11_spill] sm:$0xff] %v3225_v32 }
 0x269   :  { %v562_v31 = vpop.permute.xlu0 %561 }
 0x26a   :  { %v569_v54 = vmul.f32 %v562_v31, %v3016_v10  ;;  %v570_v55 = vmul.f32 %v562_v31, %v3020_v12  ;;  %v573_v56 = vmul.f32 %v562_v31, %v3018_v11  ;;  %v574_v57 = vmul.f32 %v562_v31, %v3022_v13 }
 0x26d   :  { %v580_v58 = vpop.permute.xlu0 %579  ;;  %v567_v33 = vpop.permute.xlu1 %566 }
 0x26e   :  { %v587_v60 = vadd.f32 %v580_v58, %v569_v54  ;;  %v588_v61 = vadd.f32 %v580_v58, %v570_v55  ;;  %v591_v62 = vadd.f32 %v580_v58, %v573_v56  ;;  %v592_v63 = vadd.f32 %v580_v58, %v574_v57 }
 0x26f   :  { %v571_v35 = vmul.f32 %v567_v33, %v3030_v14  ;;  %v572_v38 = vmul.f32 %v567_v33, %v3034_v16  ;;  %v575_v31 = vmul.f32 %v567_v33, %v3032_v15  ;;  %v576_v56 = vmul.f32 %v567_v33, %v3036_v17 }
 0x270   :  { %v595_v0 = vadd.f32 3.0, %v587_v60  ;;  %v596_v1 = vadd.f32 3.0, %v588_v61  ;;  %v599_v2 = vadd.f32 3.0, %v591_v62  ;;  %v600_v3 = vadd.f32 3.0, %v592_v63 }
 0x271   :  { %v585_v34 = vpop.permute.xlu1 %584 }
 0x272   :  { %v603_v4 = vmax.f32 %v595_v0, 0.0  ;;  %v604_v5 = vmax.f32 %v596_v1, 0.0  ;;  %v607_v10 = vmax.f32 %v599_v2, 0.0  ;;  %v608_v12 = vmax.f32 %v600_v3, 0.0  ;;  %v3327_v3 = vpop.permute.xlu0 %1210 }
 0x273   :  { %v589_v37 = vadd.f32 %v585_v34, %v571_v35  ;;  %v590_v39 = vadd.f32 %v585_v34, %v572_v38  ;;  %v593_v54 = vadd.f32 %v585_v34, %v575_v31  ;;  %v594_v57 = vadd.f32 %v585_v34, %v576_v56  ;;  %4124 = vst [vmem:[#allocation16_spill] sm:$0xff] %v3327_v3  ;;  %v638_v31 = vld [vmem:[%s4088_s5 + $0x2] sm:$0x3] }
 0x274   :  { %v611_v11 = vmin.f32 %v603_v4, 6.0  ;;  %v612_v8 = vmin.f32 %v604_v5, 6.0  ;;  %v615_v13 = vmin.f32 %v607_v10, 6.0  ;;  %v616_v20 = vmin.f32 %v608_v12, 6.0 }
 0x275   :  { %v597_v40 = vadd.f32 3.0, %v589_v37  ;;  %v598_v14 = vadd.f32 3.0, %v590_v39  ;;  %v601_v58 = vadd.f32 3.0, %v593_v54  ;;  %v602_v15 = vadd.f32 3.0, %v594_v57 }
 0x276   :  { %v619_v18 = vmul.f32 %v611_v11, %v587_v60  ;;  %v620_v19 = vmul.f32 %v612_v8, %v588_v61  ;;  %v623_v21 = vmul.f32 %v615_v13, %v591_v62  ;;  %v624_v25 = vmul.f32 %v616_v20, %v592_v63 }
 0x277   :  { %v605_v41 = vmax.f32 %v597_v40, 0.0  ;;  %v606_v16 = vmax.f32 %v598_v14, 0.0  ;;  %v609_v60 = vmax.f32 %v601_v58, 0.0  ;;  %v610_v17 = vmax.f32 %v602_v15, 0.0  ;;  %v3331_v4 = vpop.permute.xlu0 %694 }
 0x278   :  { %v3201_v22 = vmul.f32 0.16666667, %v619_v18  ;;  %v3203_v23 = vmul.f32 0.16666667, %v620_v19  ;;  %v3211_v27 = vmul.f32 0.16666667, %v623_v21  ;;  %v662_v35 = vlaneseq }
 0x279   :  { %v3219_v30 = vmul.f32 0.16666667, %v624_v25  ;;  %v613_v42 = vmin.f32 %v605_v41, 6.0  ;;  %v614_v43 = vmin.f32 %v606_v16, 6.0  ;;  %v617_v61 = vmin.f32 %v609_v60, 6.0 }
 0x27a   :  { %654 = vrot.lane.b32.xlu0 %v3203_v23, %s2880_s2  ;;  %646 = vrot.lane.b32.xlu1 %v3201_v22, %s2880_s2  ;;  %v618_v62 = vmin.f32 %v610_v17, 6.0  ;;  %v641_v16 = vld [vmem:[%s4088_s5 + $0x8] sm:$0x3] }
 0x27b   :  { %v621_v44 = vmul.f32 %v613_v42, %v589_v37  ;;  %v622_v45 = vmul.f32 %v614_v43, %v590_v39  ;;  %v625_v63 = vmul.f32 %v617_v61, %v593_v54  ;;  %v3337_v5 = vpop.permute.xlu0 %699  ;;  %v675_v39 = vshrl.u32 %v662_v35, 7 }
 0x27c   :  { %v626_v0 = vmul.f32 %v618_v62, %v594_v57  ;;  %4125 = vst [vmem:[#allocation17_spill] sm:$0xff] %v3337_v5  ;;  %v3380_v42 = vand.u32 127, %v662_v35  ;;  %v639_v57 = vld [vmem:[%s4088_s5 + $0x4] sm:$0x3] }
 0x27d   :  { %v3265_v46 = vmul.f32 0.16666667, %v621_v44  ;;  %v3272_v55 = vmul.f32 0.16666667, %v622_v45  ;;  %v3295_v1 = vmul.f32 0.16666667, %v625_v63 }
 0x27e   :  { %710 = vrot.lane.b32.xlu0 %v3201_v22, %s2881_s3  ;;  %650 = vrot.lane.b32.xlu1 %v3211_v27, %s2880_s2  ;;  %v3301_v2 = vmul.f32 0.16666667, %v626_v0  ;;  %v3373_v41 = vsub.s32 1, %v675_v39  ;;  %v3382_v43 = vsub.s32 0, %v675_v39  ;;  %v637_v45 = vld [vmem:[%s4088_s5] sm:$0x3] }
 0x27f   :  { %4120 = vst [vmem:[#allocation12_spill] sm:$0xff] %v3265_v46  ;;  %4121 = vst [vmem:[#allocation13_spill] sm:$0xff] %v3272_v55  ;;  %vm726_vm2 = vcmp.lt.s32.totalorder %v3380_v42, 16  ;;  %vm664_vm3 = vcmp.lt.s32.totalorder %v3380_v42, 17  ;;  %vm794_vm4 = vcmp.lt.s32.totalorder %v3380_v42, 15  ;;  %vm862_vm5 = vcmp.lt.s32.totalorder %v3380_v42, 1 }
 0x280   :  { %4122 = vst [vmem:[#allocation14_spill] sm:$0xff] %v3295_v1  ;;  %4123 = vst [vmem:[#allocation15_spill] sm:$0xff] %v3301_v2  ;;  %v3395_v56 = vrot.slane %v641_v16, %v3373_v41  ;;  %v3405_v15 = vrot.slane %v641_v16, %v3382_v43  ;;  %v3408_v60 = vrot.slane %v637_v45, %v3382_v43  ;;  %vm973_vm6 = vcmp.lt.s32.totalorder %v3380_v42, 127 }
 0x281   :  { %v3411_v17 = vrot.slane %v638_v31, %v3382_v43  ;;  %v3414_v61 = vrot.slane %v638_v31, %v3373_v41  ;;  %v3418_v62 = vrot.slane %v637_v45, %v3373_v41  ;;  %v3433_v45 = vrot.slane %v639_v57, %v3382_v43 }
 0x282   :  { %718 = vrot.lane.b32.xlu0 %v3203_v23, %s2881_s3  ;;  %658 = vrot.lane.b32.xlu1 %v3219_v30, %s2880_s2  ;;  %v926_v35 = vmul.f32 %v3395_v56, %v3203_v23  ;;  %v3436_v31 = vrot.slane %v639_v57, %v3373_v41  ;;  %vm1041_vm7 = vcmp.lt.s32.totalorder %v3380_v42, 113  ;;  %vm1177_vm8 = vcmp.lt.s32.totalorder %v3380_v42, 111 }
 0x283   :  { %vm1109_vm9 = vcmp.lt.s32.totalorder %v3380_v42, 112 }
 0x286   :  { %786 = vrot.lane.b32.xlu0 %v3203_v23, %s2882_s24  ;;  %714 = vrot.lane.b32.xlu1 %v3211_v27, %s2881_s3 }
 0x28a   :  { %854 = vrot.lane.b32.xlu0 %v3203_v23, %s2883_s25  ;;  %722 = vrot.lane.b32.xlu1 %v3219_v30, %s2881_s3 }
 0x28e   :  { %961 = vrot.lane.b32.xlu0 %v3211_v27, %s2884_s26  ;;  %778 = vrot.lane.b32.xlu1 %v3201_v22, %s2882_s24 }
 0x292   :  { %969 = vrot.lane.b32.xlu0 %v3219_v30, %s2884_s26  ;;  %782 = vrot.lane.b32.xlu1 %v3211_v27, %s2882_s24 }
 0x296   :  { %1025 = vrot.lane.b32.xlu0 %v3201_v22, %s2885_s27  ;;  %790 = vrot.lane.b32.xlu1 %v3219_v30, %s2882_s24 }
 0x29a   :  { %1033 = vrot.lane.b32.xlu0 %v3203_v23, %s2885_s27  ;;  %846 = vrot.lane.b32.xlu1 %v3201_v22, %s2883_s25 }
 0x29e   :  { %1101 = vrot.lane.b32.xlu0 %v3203_v23, %s2886_s28  ;;  %850 = vrot.lane.b32.xlu1 %v3211_v27, %s2883_s25 }
 0x2a2   :  { %1161 = vrot.lane.b32.xlu0 %v3201_v22, %s2887_s29  ;;  %858 = vrot.lane.b32.xlu1 %v3219_v30, %s2883_s25 }
 0x2a6   :  { %1169 = vrot.lane.b32.xlu0 %v3203_v23, %s2887_s29  ;;  %957 = vrot.lane.b32.xlu1 %v3201_v22, %s2884_s26 }
 0x2aa   :  { %648 = vrot.lane.b32.xlu0 %v3265_v46, %s2880_s2  ;;  %965 = vrot.lane.b32.xlu1 %v3203_v23, %s2884_s26 }
 0x2ae   :  { %656 = vrot.lane.b32.xlu0 %v3272_v55, %s2880_s2  ;;  %1029 = vrot.lane.b32.xlu1 %v3211_v27, %s2885_s27 }
 0x2b2   :  { %712 = vrot.lane.b32.xlu0 %v3265_v46, %s2881_s3  ;;  %1037 = vrot.lane.b32.xlu1 %v3219_v30, %s2885_s27 }
 0x2b6   :  { %720 = vrot.lane.b32.xlu0 %v3272_v55, %s2881_s3  ;;  %1093 = vrot.lane.b32.xlu1 %v3201_v22, %s2886_s28 }
 0x2ba   :  { %788 = vrot.lane.b32.xlu0 %v3272_v55, %s2882_s24  ;;  %1097 = vrot.lane.b32.xlu1 %v3211_v27, %s2886_s28 }
 0x2be   :  { %856 = vrot.lane.b32.xlu0 %v3272_v55, %s2883_s25  ;;  %1105 = vrot.lane.b32.xlu1 %v3219_v30, %s2886_s28 }
 0x2c2   :  { %963 = vrot.lane.b32.xlu0 %v3295_v1, %s2884_s26  ;;  %1165 = vrot.lane.b32.xlu1 %v3211_v27, %s2887_s29 }
 0x2c6   :  { %971 = vrot.lane.b32.xlu0 %v3301_v2, %s2884_s26  ;;  %1173 = vrot.lane.b32.xlu1 %v3219_v30, %s2887_s29 }
 0x2ca   :  { %1027 = vrot.lane.b32.xlu0 %v3265_v46, %s2885_s27  ;;  %652 = vrot.lane.b32.xlu1 %v3295_v1, %s2880_s2 }
 0x2ce   :  { %1035 = vrot.lane.b32.xlu0 %v3272_v55, %s2885_s27  ;;  %660 = vrot.lane.b32.xlu1 %v3301_v2, %s2880_s2 }
 0x2d2   :  { %1103 = vrot.lane.b32.xlu0 %v3272_v55, %s2886_s28  ;;  %716 = vrot.lane.b32.xlu1 %v3295_v1, %s2881_s3 }
 0x2d6   :  { %1163 = vrot.lane.b32.xlu0 %v3265_v46, %s2887_s29  ;;  %724 = vrot.lane.b32.xlu1 %v3301_v2, %s2881_s3 }
 0x2da   :  { %1171 = vrot.lane.b32.xlu0 %v3272_v55, %s2887_s29  ;;  %780 = vrot.lane.b32.xlu1 %v3265_v46, %s2882_s24 }
 0x2de   :  { %784 = vrot.lane.b32.xlu1 %v3295_v1, %s2882_s24 }
 0x2e2   :  { %792 = vrot.lane.b32.xlu1 %v3301_v2, %s2882_s24 }
 0x2e6   :  { %848 = vrot.lane.b32.xlu1 %v3265_v46, %s2883_s25 }
 0x2ea   :  { %852 = vrot.lane.b32.xlu1 %v3295_v1, %s2883_s25 }
 0x2ec   :  { %v647_v10 = vpop.permute.xlu1 %646  ;;  %v655_v12 = vpop.permute.xlu0 %654 }
 0x2ed   :  { %v665_v39 = vsel %vm664_vm3, %v647_v10, %v655_v12  ;;  %v669_v16 = vsel %vm664_vm3, %v655_v12, %v647_v10  ;;  %v925_v12 = vmul.f32 %v3405_v15, %v3201_v22 }
 0x2ee   :  { %860 = vrot.lane.b32.xlu1 %v3301_v2, %s2883_s25  ;;  %v684_v3 = vmul.f32 %v3408_v60, %v669_v16 }
 0x2f0   :  { %v3343_v11 = vpop.permute.xlu1 %650  ;;  %v711_v8 = vpop.permute.xlu0 %710 }
 0x2f2   :  { %959 = vrot.lane.b32.xlu1 %v3265_v46, %s2884_s26 }
 0x2f4   :  { %v3347_v13 = vpop.permute.xlu1 %658  ;;  %v719_v18 = vpop.permute.xlu0 %718 }
 0x2f5   :  { %v727_v63 = vsel %vm726_vm2, %v711_v8, %v719_v18  ;;  %v731_v0 = vsel %vm726_vm2, %v719_v18, %v711_v8  ;;  %v640_v8 = vld [vmem:[%s4088_s5 + $0x6] sm:$0x3] }
 0x2f6   :  { %967 = vrot.lane.b32.xlu1 %v3272_v55, %s2884_s26  ;;  %v746_v57 = vmul.f32 %v3411_v17, %v731_v0  ;;  %v747_v9 = vmul.f32 %v3414_v61, %v727_v63  ;;  %v3463_v32 = vrot.slane %v640_v8, %v3373_v41 }
 0x2f8   :  { %v3351_v19 = vpop.permute.xlu1 %714  ;;  %v787_v20 = vpop.permute.xlu0 %786  ;;  %v762_v36 = vmul.f32 %v3187_v53, %v746_v57  ;;  %v763_v52 = vmul.f32 %v3187_v53, %v747_v9 }
 0x2fa   :  { %1031 = vrot.lane.b32.xlu1 %v3295_v1, %s2885_s27 }
 0x2fc   :  { %v3355_v21 = vpop.permute.xlu1 %722  ;;  %v855_v25 = vpop.permute.xlu0 %854 }
 0x2fd   :  { %v729_v5 = vsel %vm726_vm2, %v3351_v19, %v3355_v21 }
 0x2fe   :  { %1039 = vrot.lane.b32.xlu1 %v3301_v2, %s2885_s27 }
 0x300   :  { %v779_v33 = vpop.permute.xlu1 %778  ;;  %v3359_v34 = vpop.permute.xlu0 %961 }
 0x301   :  { %v795_v18 = vsel %vm794_vm4, %v779_v33, %v787_v20  ;;  %v799_v23 = vsel %vm794_vm4, %v787_v20, %v779_v33  ;;  %v685_v20 = vmul.f32 %v3418_v62, %v665_v39  ;;  %v3460_v33 = vrot.slane %v640_v8, %v3382_v43  ;;  %v643_v39 = vld [vmem:[%s4088_s5 + $0xc] sm:$0x3] }
 0x302   :  { %1095 = vrot.lane.b32.xlu1 %v3265_v46, %s2886_s28  ;;  %v814_v22 = vmul.f32 %v3433_v45, %v799_v23  ;;  %v815_v0 = vmul.f32 %v3436_v31, %v795_v18  ;;  %v3479_v23 = vmul.f32 %v3181_v51, %v926_v35  ;;  %v941_v18 = vmul.f32 %v3181_v51, %v925_v12 }
 0x303   :  { %v3494_v55 = vrot.slane %v643_v39, %v3382_v43  ;;  %v3497_v12 = vrot.slane %v643_v39, %v3373_v41  ;;  %v703_v57 = vmul.f32 %v3331_v4, %v685_v20 }
 0x304   :  { %v3363_v37 = vpop.permute.xlu1 %782  ;;  %v3365_v38 = vpop.permute.xlu0 %969  ;;  %v830_v46 = vmul.f32 %v3173_v47, %v814_v22  ;;  %v831_v24 = vmul.f32 %v3173_v47, %v815_v0 }
 0x305   :  { %v771_v22 = vadd.f32 %v763_v52, %v703_v57 }
 0x306   :  { %1099 = vrot.lane.b32.xlu1 %v3295_v1, %s2886_s28 }
 0x308   :  { %v3369_v40 = vpop.permute.xlu1 %790  ;;  %v3371_v14 = vpop.permute.xlu0 %1025 }
 0x30a   :  { %1107 = vrot.lane.b32.xlu1 %v3301_v2, %s2886_s28 }
 0x30c   :  { %v847_v44 = vpop.permute.xlu1 %846  ;;  %v3390_v54 = vpop.permute.xlu0 %1033 }
 0x30d   :  { %v863_v63 = vsel %vm862_vm5, %v847_v44, %v855_v25  ;;  %v867_v28 = vsel %vm862_vm5, %v855_v25, %v847_v44  ;;  %v645_v44 = vld [vmem:[%s4088_s5 + $0x10] sm:$0x3] }
 0x30e   :  { %1167 = vrot.lane.b32.xlu1 %v3295_v1, %s2887_s29  ;;  %v882_v50 = vmul.f32 %v3460_v33, %v867_v28  ;;  %v883_v35 = vmul.f32 %v3463_v32, %v863_v63  ;;  %v667_v28 = vsel %vm664_vm3, %v3343_v11, %v3347_v13  ;;  %v671_v63 = vsel %vm664_vm3, %v3347_v13, %v3343_v11 }
 0x30f   :  { %v733_v11 = vsel %vm726_vm2, %v3355_v21, %v3351_v19  ;;  %v3530_v57 = vrot.slane %v645_v44, %v3373_v41  ;;  %v801_v19 = vsel %vm794_vm4, %v3369_v40, %v3363_v37 }
 0x310   :  { %v3402_v58 = vpop.permute.xlu1 %850  ;;  %v3446_v6 = vpop.permute.xlu0 %1101  ;;  %v898_v13 = vmul.f32 %v3177_v49, %v882_v50  ;;  %v899_v52 = vmul.f32 %v3177_v49, %v883_v35  ;;  %v688_v35 = vmul.f32 %v3408_v60, %v671_v63  ;;  %v818_v63 = vmul.f32 %v3433_v45, %v801_v19 }
 0x312   :  { %1175 = vrot.lane.b32.xlu1 %v3301_v2, %s2887_s29  ;;  %v642_v2 = vld [vmem:[%s4088_s5 + $0xa] sm:$0x3] }
 0x313   :  { %v3476_v16 = vrot.slane %v642_v2, %v3382_v43  ;;  %v3485_v25 = vrot.slane %v642_v2, %v3373_v41  ;;  %v702_v2 = vmul.f32 %v3331_v4, %v684_v3  ;;  %v3513_v3 = vrot.slane %v645_v44, %v3382_v43  ;;  %v644_v44 = vld [vmem:[%s4088_s5 + $0xe] sm:$0x3] }
 0x314   :  { %v3448_v10 = vpop.permute.xlu1 %858  ;;  %v1162_v9 = vpop.permute.xlu0 %1161 }
 0x315   :  { %v770_v39 = vadd.f32 %v762_v36, %v702_v2  ;;  %v839_v2 = vadd.f32 %v831_v24, %v771_v22  ;;  %v751_v22 = vmul.f32 %v3414_v61, %v729_v5  ;;  %v3566_v5 = vrot.slane %v644_v44, %v3373_v41 }
 0x317   :  { %v838_v36 = vadd.f32 %v830_v46, %v770_v39  ;;  %v750_v39 = vmul.f32 %v3411_v17, %v733_v11  ;;  %v3563_v11 = vrot.slane %v644_v44, %v3382_v43  ;;  %v706_v43 = vmul.f32 %v3331_v4, %v688_v35 }
 0x318   :  { %v958_v8 = vpop.permute.xlu1 %957  ;;  %v1170_v50 = vpop.permute.xlu0 %1169  ;;  %v767_v44 = vmul.f32 %v3187_v53, %v751_v22 }
 0x319   :  { %v766_v19 = vmul.f32 %v3187_v53, %v750_v39  ;;  %v1182_v35 = vsel %vm1177_vm8, %v1170_v50, %v1162_v9 }
 0x31c   :  { %v966_v20 = vpop.permute.xlu1 %965 }
 0x31d   :  { %v974_v0 = vsel %vm973_vm6, %v958_v8, %v966_v20  ;;  %v978_v1 = vsel %vm973_vm6, %v966_v20, %v958_v8  ;;  %v797_v8 = vsel %vm794_vm4, %v3363_v37, %v3369_v40  ;;  %v689_v20 = vmul.f32 %v3418_v62, %v667_v28 }
 0x31e   :  { %v993_v21 = vmul.f32 %v3476_v16, %v974_v0  ;;  %v994_v24 = vmul.f32 %v3485_v25, %v978_v1  ;;  %v906_v37 = vadd.f32 %v898_v13, %v838_v36  ;;  %v907_v40 = vadd.f32 %v899_v52, %v839_v2 }
 0x31f   :  { %v1042_v1 = vsel %vm1041_vm7, %v3371_v14, %v3390_v54  ;;  %v1046_v0 = vsel %vm1041_vm7, %v3390_v54, %v3371_v14  ;;  %v819_v28 = vmul.f32 %v3436_v31, %v797_v8  ;;  %v865_v13 = vsel %vm862_vm5, %v3402_v58, %v3448_v10 }
 0x320   :  { %v3543_v46 = vpop.permute.xlu1 %1029  ;;  %v869_v14 = vsel %vm862_vm5, %v3448_v10, %v3402_v58  ;;  %v1009_v54 = vmul.f32 %v3185_v29, %v993_v21  ;;  %v1010_v52 = vmul.f32 %v3185_v29, %v994_v24  ;;  %v707_v41 = vmul.f32 %v3331_v4, %v689_v20  ;;  %v3585_v10 = vpop.permute.xlu0 %648 }
 0x321   :  { %v1061_v2 = vmul.f32 %v3494_v55, %v1042_v1  ;;  %v1062_v8 = vmul.f32 %v3497_v12, %v1046_v0  ;;  %v949_v7 = vadd.f32 %v941_v18, %v906_v37  ;;  %v950_v58 = vadd.f32 %v3479_v23, %v907_v40 }
 0x322   :  { %v886_v21 = vmul.f32 %v3460_v33, %v869_v14  ;;  %v887_v24 = vmul.f32 %v3463_v32, %v865_v13  ;;  %v1178_v4 = vsel %vm1177_vm8, %v1162_v9, %v1170_v50  ;;  %v834_v20 = vmul.f32 %v3173_v47, %v818_v63 }
 0x323   :  { %v835_v39 = vmul.f32 %v3173_v47, %v819_v28  ;;  %v1017_v53 = vadd.f32 %v1009_v54, %v949_v7  ;;  %v1018_v18 = vadd.f32 %v1010_v52, %v950_v58  ;;  %v1077_v23 = vmul.f32 %v3191_v26, %v1061_v2 }
 0x324   :  { %v1038_v36 = vpop.permute.xlu1 %1037  ;;  %v1078_v37 = vmul.f32 %v3191_v26, %v1062_v8  ;;  %v1197_v9 = vmul.f32 %v3513_v3, %v1178_v4  ;;  %v1198_v50 = vmul.f32 %v3530_v57, %v1182_v35  ;;  %v774_v0 = vadd.f32 %v766_v19, %v706_v43  ;;  %v3609_v14 = vpop.permute.xlu0 %656 }
 0x325   :  { %v775_v63 = vadd.f32 %v767_v44, %v707_v41  ;;  %v902_v28 = vmul.f32 %v3177_v49, %v886_v21  ;;  %v903_v13 = vmul.f32 %v3177_v49, %v887_v24  ;;  %v1085_v54 = vadd.f32 %v1077_v23, %v1017_v53 }
 0x326   :  { %v1086_v8 = vadd.f32 %v1078_v37, %v1018_v18  ;;  %v842_v58 = vadd.f32 %v834_v20, %v774_v0  ;;  %v929_v35 = vmul.f32 %v3405_v15, %v3211_v27  ;;  %v930_v43 = vmul.f32 %v3395_v56, %v3219_v30 }
 0x327   :  { %v843_v4 = vadd.f32 %v835_v39, %v775_v63  ;;  %v1213_v41 = vmul.f32 %v3175_v48, %v1197_v9  ;;  %v1214_v49 = vmul.f32 %v3175_v48, %v1198_v50  ;;  %v976_v21 = vsel %vm973_vm6, %v3359_v34, %v3365_v38 }
 0x328   :  { %v1094_v22 = vpop.permute.xlu1 %1093  ;;  %v980_v24 = vsel %vm973_vm6, %v3365_v38, %v3359_v34  ;;  %v1044_v27 = vsel %vm1041_vm7, %v3543_v46, %v1038_v36  ;;  %v1048_v30 = vsel %vm1041_vm7, %v1038_v36, %v3543_v46  ;;  %v910_v20 = vadd.f32 %v902_v28, %v842_v58  ;;  %v3647_v9 = vpop.permute.xlu0 %712 }
 0x329   :  { %v1110_v40 = vsel %vm1109_vm9, %v1094_v22, %v3446_v6  ;;  %v1114_v1 = vsel %vm1109_vm9, %v3446_v6, %v1094_v22  ;;  %v911_v39 = vadd.f32 %v903_v13, %v843_v4  ;;  %v945_v23 = vmul.f32 %v3181_v51, %v929_v35 }
 0x32a   :  { %v1129_v47 = vmul.f32 %v3563_v11, %v1110_v40  ;;  %v1130_v7 = vmul.f32 %v3566_v5, %v1114_v1  ;;  %v946_v37 = vmul.f32 %v3181_v51, %v930_v43  ;;  %v997_v40 = vmul.f32 %v3476_v16, %v976_v21 }
 0x32b   :  { %v998_v46 = vmul.f32 %v3485_v25, %v980_v24  ;;  %v1065_v36 = vmul.f32 %v3494_v55, %v1044_v27  ;;  %v1066_v1 = vmul.f32 %v3497_v12, %v1048_v30  ;;  %v953_v51 = vadd.f32 %v945_v23, %v910_v20 }
 0x32c   :  { %v1145_v52 = vmul.f32 %v3197_v59, %v1129_v47  ;;  %v1146_v6 = vmul.f32 %v3197_v59, %v1130_v7  ;;  %v1098_v2 = vpop.permute.xlu1 %1097  ;;  %v954_v50 = vadd.f32 %v946_v37, %v911_v39  ;;  %v4126_v63 = vmov 1.0|1.0  }
 0x32d   :  { %v1013_v28 = vmul.f32 %v3185_v29, %v997_v40  ;;  %v1014_v13 = vmul.f32 %v3185_v29, %v998_v46 }
 0x32e   :  { %v1153_v19 = vadd.f32 %v1145_v52, %v1085_v54  ;;  %v1154_v44 = vadd.f32 %v1146_v6, %v1086_v8  ;;  %v1081_v54 = vmul.f32 %v3191_v26, %v1065_v36  ;;  %v1082_v52 = vmul.f32 %v3191_v26, %v1066_v1  ;;  %v721_v8 = vpop.permute.xlu0 %720 }
 0x32f   :  { %v1021_v6 = vadd.f32 %v1013_v28, %v953_v51  ;;  %v666_v28 = vsel %vm664_vm3, %v3585_v10, %v3609_v14 }
 0x330   :  { %v3633_v53 = vadd.f32 %v1213_v41, %v1153_v19  ;;  %v1106_v18 = vpop.permute.xlu1 %1105  ;;  %v3635_v22 = vadd.f32 %v1214_v49, %v1154_v44 }
 0x331   :  { %v1112_v34 = vsel %vm1109_vm9, %v1098_v2, %v1106_v18  ;;  %v1116_v38 = vsel %vm1109_vm9, %v1106_v18, %v1098_v2  ;;  %v1022_v2 = vadd.f32 %v1014_v13, %v954_v50  ;;  %v1089_v41 = vadd.f32 %v1081_v54, %v1021_v6 }
 0x332   :  { %1297 = vmatprep.mubr.f32.mxu0 %v3635_v22  ;;  %v1133_v47 = vmul.f32 %v3563_v11, %v1112_v34  ;;  %v1134_v7 = vmul.f32 %v3566_v5, %v1116_v38  ;;  %v789_v30 = vpop.permute.xlu0 %788  ;;  %v670_v13 = vsel %vm664_vm3, %v3609_v14, %v3585_v10 }
 0x333   :  { %1298 = vmatmul.mubr.f32.vlgmr.msra.gmra.mrb[12].mxu0 %v3633_v53  ;;  %v1090_v26 = vadd.f32 %v1082_v52, %v1022_v2 }
 0x334   :  { %v1166_v0 = vpop.permute.xlu1 %1165  ;;  %2691 = vmatpush3.bf16.msra.mxu0 %v4126_v63  ;;  %v1149_v58 = vmul.f32 %v3197_v59, %v1133_v47  ;;  %v1150_v4 = vmul.f32 %v3197_v59, %v1134_v7  ;;  %v728_v7 = vsel %vm726_vm2, %v3647_v9, %v721_v8 }
 0x335   :  { %2692 = vmatprep.subr.bf16.mxu0 %v4126_v63  ;;  %v749_v6 = vmul.f32 %v3414_v61, %v728_v7 }
 0x336   :  { %v1157_v44 = vadd.f32 %v1149_v58, %v1089_v41  ;;  %v1158_v27 = vadd.f32 %v1150_v4, %v1090_v26  ;;  %v686_v58 = vmul.f32 %v3408_v60, %v670_v13  ;;  %v687_v4 = vmul.f32 %v3418_v62, %v666_v28  ;;  %v4127_v41 = vld [vmem:[#allocation8_spill] sm:$0xff] }
 0x337   :  { %v4131_v28 = vld [vmem:[#allocation12_spill] sm:$0xff] }
 0x338   :  { %v1174_v35 = vpop.permute.xlu1 %1173  ;;  %2693 = vmatpush3.bf16.msra.mxu0 %v4126_v63  ;;  %v927_v13 = vmul.f32 %v3405_v15, %v4131_v28  ;;  %v4134_v28 = vld [vmem:[#allocation6_spill] sm:$0xff] }
 0x339   :  { %v1180_v43 = vsel %vm1177_vm8, %v1166_v0, %v1174_v35  ;;  %v1184_v29 = vsel %vm1177_vm8, %v1174_v35, %v1166_v0  ;;  %2694 = vmatprep.subr.bf16.mxu0 %v4126_v63  ;;  %v732_v0 = vsel %vm726_vm2, %v721_v8, %v3647_v9 }
 0x33a   :  { %v1201_v49 = vmul.f32 %v3513_v3, %v1180_v43  ;;  %v1202_v19 = vmul.f32 %v3530_v57, %v1184_v29  ;;  %v748_v52 = vmul.f32 %v3411_v17, %v732_v0 }
 0x33c   :  { %v1217_v59 = vmul.f32 %v3175_v48, %v1201_v49  ;;  %v1218_v21 = vmul.f32 %v3175_v48, %v1202_v19  ;;  %v3671_v24 = vpop.permute.xlu1 %652  ;;  %2695 = vmatpush3.bf16.msra.mxu0 %v4126_v63  ;;  %v857_v48 = vpop.permute.xlu0 %856  ;;  %v764_v26 = vmul.f32 %v4127_v41, %v748_v52  ;;  %v765_v49 = vmul.f32 %v4127_v41, %v749_v6  ;;  %v4132_v52 = vld [vmem:[#allocation13_spill] sm:$0xff] }
 0x33d   :  { %2696 = vmatprep.subr.bf16.mxu0 %v4126_v63  ;;  %v928_v6 = vmul.f32 %v3395_v56, %v4132_v52  ;;  %v943_v52 = vmul.f32 %v4134_v28, %v927_v13 }
 0x33e   :  { %v3675_v20 = vadd.f32 %v1217_v59, %v1157_v44  ;;  %v3677_v39 = vadd.f32 %v1218_v21, %v1158_v27  ;;  %v4128_v59 = vld [vmem:[#allocation17_spill] sm:$0xff] }
 0x33f   :  { %v704_v21 = vmul.f32 %v4128_v59, %v686_v58  ;;  %v705_v27 = vmul.f32 %v4128_v59, %v687_v4 }
 0x340   :  { %v3679_v18 = vpop.permute.xlu1 %660  ;;  %1372 = vmatprep.mubr.f32.mxu1 %v3677_v39  ;;  %2697 = vmatpush3.bf16.msra.mxu0 %v4126_v63  ;;  %v3697_v34 = vpop.permute.xlu0 %963 }
 0x341   :  { %1373 = vmatmul.mubr.f32.vlgmr.msra.gmra.mrb[12].mxu1 %v3675_v20  ;;  %2698 = vmatprep.subr.bf16.mxu0 %v4126_v63  ;;  %v773_v58 = vadd.f32 %v765_v49, %v705_v27 }
 0x342   :  { %2707 = vmatpush3.bf16.msra.mxu1 %v4126_v63 }
 0x343   :  { %2708 = vmatprep.subr.bf16.mxu1 %v4126_v63 }
 0x344   :  { %v3687_v23 = vpop.permute.xlu1 %716  ;;  %2699 = vmatpush3.bf16.msra.mxu0 %v4126_v63  ;;  %v3705_v40 = vpop.permute.xlu0 %971 }
 0x345   :  { %2700 = vmatprep.subr.bf16.mxu0 %v4126_v63 }
 0x346   :  { %2709 = vmatpush3.bf16.msra.mxu1 %v4126_v63 }
 0x347   :  { %2710 = vmatprep.subr.bf16.mxu1 %v4126_v63 }
 0x348   :  { %v3693_v37 = vpop.permute.xlu1 %724  ;;  %2701 = vmatpush3.bf16.msra.mxu0 %v4126_v63  ;;  %v1028_v1 = vpop.permute.xlu0 %1027 }
 0x349   :  { %2702 = vmatprep.subr.bf16.mxu0 %v4126_v63 }
 0x34a   :  { %2711 = vmatpush3.bf16.msra.mxu1 %v4126_v63 }
 0x34b   :  { %2712 = vmatprep.subr.bf16.mxu1 %v4126_v63 }
 0x34c   :  { %v781_v38 = vpop.permute.xlu1 %780  ;;  %2703 = vmatpush3.bf16.msra.mxu0 %v4126_v63  ;;  %v1036_v50 = vpop.permute.xlu0 %1035 }
 0x34d   :  { %2704 = vmatprep.subr.bf16.mxu0 %v4126_v63  ;;  %v796_v9 = vsel %vm794_vm4, %v781_v38, %v789_v30  ;;  %v800_v2 = vsel %vm794_vm4, %v789_v30, %v781_v38  ;;  %v4129_v30 = vld [vmem:[#allocation14_spill] sm:$0xff]  ;;  %v1043_v49 = vsel %vm1041_vm7, %v1028_v1, %v1036_v50 }
 0x34e   :  { %2713 = vmatpush3.bf16.msra.mxu1 %v4126_v63  ;;  %v816_v35 = vmul.f32 %v3433_v45, %v800_v2  ;;  %v817_v43 = vmul.f32 %v3436_v31, %v796_v9  ;;  %v772_v2 = vadd.f32 %v764_v26, %v704_v21  ;;  %v730_v21 = vsel %vm726_vm2, %v3687_v23, %v3693_v37 }
 0x34f   :  { %2714 = vmatprep.subr.bf16.mxu1 %v4126_v63 }
 0x350   :  { %v3707_v46 = vpop.permute.xlu1 %784  ;;  %2705 = vmatpush3.bf16.msra.mxu0 %v4126_v63  ;;  %v3741_v8 = vpop.permute.xlu0 %1103 }
 0x352   :  { %2715 = vmatpush3.bf16.msra.mxu1 %v4126_v63 }
 0x353   :  { %2716 = vmatprep.subr.bf16.mxu1 %v4126_v63 }
 0x354   :  { %v3712_v36 = vpop.permute.xlu1 %792  ;;  %v1164_v38 = vpop.permute.xlu0 %1163 }
 0x356   :  { %2717 = vmatpush3.bf16.msra.mxu1 %v4126_v63 }
 0x357   :  { %2718 = vmatprep.subr.bf16.mxu1 %v4126_v63 }
 0x358   :  { %v849_v51 = vpop.permute.xlu1 %848 }
 0x359   :  { %v864_v10 = vsel %vm862_vm5, %v849_v51, %v857_v48  ;;  %v868_v14 = vsel %vm862_vm5, %v857_v48, %v849_v51  ;;  %v3759_v48 = vmul.f32 %v3405_v15, %v4129_v30  ;;  %v4130_v51 = vld [vmem:[#allocation9_spill] sm:$0xff]  ;;  %v672_v15 = vsel %vm664_vm3, %v3679_v18, %v3671_v24 }
 0x35a   :  { %2719 = vmatpush3.bf16.msra.mxu1 %v4126_v63  ;;  %v884_v19 = vmul.f32 %v3460_v33, %v868_v14  ;;  %v885_v44 = vmul.f32 %v3463_v32, %v864_v10  ;;  %v832_v7 = vmul.f32 %v4130_v51, %v816_v35  ;;  %v833_v0 = vmul.f32 %v4130_v51, %v817_v43  ;;  %v4133_v35 = vld [vmem:[#allocation5_spill] sm:$0xff] }
 0x35b   :  { %2720 = vmatprep.subr.bf16.mxu1 %v4126_v63  ;;  %v668_v14 = vsel %vm664_vm3, %v3671_v24, %v3679_v18  ;;  %v734_v24 = vsel %vm726_vm2, %v3693_v37, %v3687_v23  ;;  %v1172_v37 = vpop.permute.xlu0 %1171 }
 0x35c   :  { %v3718_v47 = vpop.permute.xlu1 %852  ;;  %v900_v43 = vmul.f32 %v4133_v35, %v884_v19  ;;  %v901_v26 = vmul.f32 %v4133_v35, %v885_v44  ;;  %v840_v18 = vadd.f32 %v832_v7, %v772_v2  ;;  %v841_v19 = vadd.f32 %v833_v0, %v773_v58 }
 0x35d   :  { %v752_v2 = vmul.f32 %v3411_v17, %v734_v24  ;;  %v753_v58 = vmul.f32 %v3414_v61, %v730_v21  ;;  %v4136_v24 = vld [vmem:[#allocation10_spill] sm:$0xff] }
 0x35e   :  { %2721 = vmatpush3.bf16.msra.mxu1 %v4126_v63  ;;  %v1063_v63 = vmul.f32 %v3494_v55, %v1043_v49  ;;  %v908_v7 = vadd.f32 %v900_v43, %v840_v18  ;;  %v909_v0 = vadd.f32 %v901_v26, %v841_v19 }
 0x35f   :  { %v768_v49 = vmul.f32 %v4127_v41, %v752_v2 }
 0x360   :  { %v861_v54 = vpop.permute.xlu1 %860  ;;  %v1079_v18 = vmul.f32 %v4136_v24, %v1063_v63 }
 0x361   :  { %v866_v13 = vsel %vm862_vm5, %v3718_v47, %v861_v54  ;;  %v870_v17 = vsel %vm862_vm5, %v861_v54, %v3718_v47  ;;  %v951_v47 = vadd.f32 %v943_v52, %v908_v7  ;;  %v4137_v7 = vld [vmem:[#allocation11_spill] sm:$0xff] }
 0x362   :  { %v888_v21 = vmul.f32 %v3460_v33, %v870_v17 }
 0x364   :  { %v960_v29 = vpop.permute.xlu1 %959 }
 0x368   :  { %v968_v9 = vpop.permute.xlu1 %967 }
 0x369   :  { %v975_v4 = vsel %vm973_vm6, %v960_v29, %v968_v9  ;;  %v979_v10 = vsel %vm973_vm6, %v968_v9, %v960_v29  ;;  %v1047_v29 = vsel %vm1041_vm7, %v1036_v50, %v1028_v1  ;;  %v690_v1 = vmul.f32 %v3408_v60, %v672_v15 }
 0x36a   :  { %v995_v44 = vmul.f32 %v3476_v16, %v975_v4  ;;  %v996_v27 = vmul.f32 %v3485_v25, %v979_v10  ;;  %v691_v50 = vmul.f32 %v3418_v62, %v668_v14  ;;  %v944_v9 = vmul.f32 %v4134_v28, %v928_v6  ;;  %v4135_v6 = vld [vmem:[#allocation7_spill] sm:$0xff] }
 0x36b   :  { %v1064_v23 = vmul.f32 %v3497_v12, %v1047_v29  ;;  %v798_v60 = vsel %vm794_vm4, %v3707_v46, %v3712_v36  ;;  %v802_v62 = vsel %vm794_vm4, %v3712_v36, %v3707_v46  ;;  %v708_v14 = vmul.f32 %v4128_v59, %v690_v1 }
 0x36c   :  { %v3795_v30 = vpop.permute.xlu1 %1031  ;;  %v1011_v61 = vmul.f32 %v4135_v6, %v995_v44  ;;  %v1012_v4 = vmul.f32 %v4135_v6, %v996_v27  ;;  %v709_v15 = vmul.f32 %v4128_v59, %v691_v50  ;;  %v1179_v46 = vsel %vm1177_vm8, %v1164_v38, %v1172_v37 }
 0x36d   :  { %v1183_v36 = vsel %vm1177_vm8, %v1172_v37, %v1164_v38  ;;  %v820_v43 = vmul.f32 %v3433_v45, %v802_v62  ;;  %v821_v26 = vmul.f32 %v3436_v31, %v798_v60  ;;  %v952_v54 = vadd.f32 %v944_v9, %v909_v0  ;;  %v4138_v62 = vld [vmem:[#allocation16_spill] sm:$0xff] }
 0x36e   :  { %v769_v29 = vmul.f32 %v4127_v41, %v753_v58  ;;  %v889_v59 = vmul.f32 %v3463_v32, %v866_v13  ;;  %v1080_v19 = vmul.f32 %v4136_v24, %v1064_v23  ;;  %v1019_v44 = vadd.f32 %v1011_v61, %v951_v47  ;;  %v4139_v61 = vld [vmem:[#allocation15_spill] sm:$0xff] }
 0x36f   :  { %v1020_v38 = vadd.f32 %v1012_v4, %v952_v54  ;;  %v1199_v45 = vmul.f32 %v3513_v3, %v1179_v46  ;;  %v1200_v31 = vmul.f32 %v3530_v57, %v1183_v36  ;;  %v836_v32 = vmul.f32 %v4130_v51, %v820_v43 }
 0x370   :  { %v1040_v10 = vpop.permute.xlu1 %1039  ;;  %v837_v63 = vmul.f32 %v4130_v51, %v821_v26  ;;  %v776_v52 = vadd.f32 %v768_v49, %v708_v14  ;;  %v777_v9 = vadd.f32 %v769_v29, %v709_v15  ;;  %v904_v23 = vmul.f32 %v4133_v35, %v888_v21 }
 0x371   :  { %v905_v37 = vmul.f32 %v4133_v35, %v889_v59  ;;  %v1087_v60 = vadd.f32 %v1079_v18, %v1019_v44  ;;  %v977_v51 = vsel %vm973_vm6, %v3697_v34, %v3705_v40  ;;  %v1215_v13 = vmul.f32 %v4138_v62, %v1199_v45 }
 0x372   :  { %v1216_v17 = vmul.f32 %v4138_v62, %v1200_v31  ;;  %v932_v4 = vmul.f32 %v3395_v56, %v4139_v61  ;;  %v844_v35 = vadd.f32 %v836_v32, %v776_v52  ;;  %v845_v14 = vadd.f32 %v837_v63, %v777_v9 }
 0x373   :  { %v981_v36 = vsel %vm973_vm6, %v3705_v40, %v3697_v34  ;;  %v947_v43 = vmul.f32 %v4134_v28, %v3759_v48  ;;  %v1045_v26 = vsel %vm1041_vm7, %v3795_v30, %v1040_v10  ;;  %v1049_v56 = vsel %vm1041_vm7, %v1040_v10, %v3795_v30 }
 0x374   :  { %v1096_v27 = vpop.permute.xlu1 %1095  ;;  %v912_v47 = vadd.f32 %v904_v23, %v844_v35  ;;  %v913_v54 = vadd.f32 %v905_v37, %v845_v14  ;;  %v999_v34 = vmul.f32 %v3476_v16, %v977_v51  ;;  %v948_v40 = vmul.f32 %v4134_v28, %v932_v4 }
 0x375   :  { %v1111_v1 = vsel %vm1109_vm9, %v1096_v27, %v3741_v8  ;;  %v1115_v33 = vsel %vm1109_vm9, %v3741_v8, %v1096_v27  ;;  %v1088_v8 = vadd.f32 %v1080_v19, %v1020_v38  ;;  %v1000_v18 = vmul.f32 %v3485_v25, %v981_v36 }
 0x376   :  { %v1131_v41 = vmul.f32 %v3563_v11, %v1111_v1  ;;  %v1132_v50 = vmul.f32 %v3566_v5, %v1115_v33  ;;  %v1067_v30 = vmul.f32 %v3494_v55, %v1045_v26  ;;  %v1068_v10 = vmul.f32 %v3497_v12, %v1049_v56 }
 0x377   :  { %v1390_v19 = vmul.f32 %v3635_v22, %v3635_v22  ;;  %v955_v16 = vadd.f32 %v947_v43, %v912_v47  ;;  %v956_v28 = vadd.f32 %v948_v40, %v913_v54  ;;  %v1015_v25 = vmul.f32 %v4135_v6, %v999_v34 }
 0x378   :  { %v1147_v0 = vmul.f32 %v4137_v7, %v1131_v41  ;;  %v1148_v2 = vmul.f32 %v4137_v7, %v1132_v50  ;;  %v1100_v58 = vpop.permute.xlu1 %1099  ;;  %v1389_v55 = vmul.f32 %v3633_v53, %v3633_v53  ;;  %v1016_v12 = vmul.f32 %v4135_v6, %v1000_v18 }
 0x379   :  { %v1083_v45 = vmul.f32 %v4136_v24, %v1067_v30  ;;  %v1084_v31 = vmul.f32 %v4136_v24, %v1068_v10 }
 0x37a   :  { %v1156_v15 = vadd.f32 %v1148_v2, %v1088_v8  ;;  %v1155_v46 = vadd.f32 %v1147_v0, %v1087_v60  ;;  %v1024_v33 = vadd.f32 %v1016_v12, %v956_v28 }
 0x37c   :  { %v1108_v49 = vpop.permute.xlu1 %1107  ;;  %v3871_v29 = vadd.f32 %v1216_v17, %v1156_v15  ;;  %v3873_v21 = vadd.f32 %v1215_v13, %v1155_v46  ;;  %v1092_v52 = vadd.f32 %v1084_v31, %v1024_v33 }
 0x37d   :  { %v1113_v48 = vsel %vm1109_vm9, %v1100_v58, %v1108_v49  ;;  %v1117_v59 = vsel %vm1109_vm9, %v1108_v49, %v1100_v58  ;;  %v4140_v58 = vmov 0.0  }
 0x37e   :  { %1302 = vmatprep.mubr.f32.mxu0 %v3871_v29  ;;  %v1135_v44 = vmul.f32 %v3563_v11, %v1113_v48  ;;  %v1136_v38 = vmul.f32 %v3566_v5, %v1117_v59  ;;  %v1392_v1 = vmul.f32 %v3871_v29, %v3871_v29  ;;  %v1023_v11 = vadd.f32 %v1015_v25, %v955_v16 }
 0x37f   :  { %1303 = vmatmul.mubr.f32.gmra.mrb[14].mxu0 %v3873_v21  ;;  %v1391_v24 = vmul.f32 %v3873_v21, %v3873_v21 }
 0x380   :  { %v1168_v27 = vpop.permute.xlu1 %1167  ;;  %1461 = vmatprep.mubr.f32.mxu0 %v1390_v19  ;;  %v1151_v5 = vmul.f32 %v4137_v7, %v1135_v44  ;;  %v1152_v32 = vmul.f32 %v4137_v7, %v1136_v38  ;;  %v1091_v50 = vadd.f32 %v1083_v45, %v1023_v11 }
 0x382   :  { %v1160_v0 = vadd.f32 %v1152_v32, %v1092_v52  ;;  %v1159_v2 = vadd.f32 %v1151_v5, %v1091_v50 }
 0x383   :  { %1462 = vmatmul.mubr.f32.vlgmr.msra.gmra.mrb[16].mxu0 %v1389_v55 }
 0x384   :  { %v1176_v63 = vpop.permute.xlu1 %1175  ;;  %1466 = vmatprep.mubr.f32.mxu0 %v1392_v1 }
 0x385   :  { %v1181_v41 = vsel %vm1177_vm8, %v1168_v27, %v1176_v63  ;;  %v1185_v6 = vsel %vm1177_vm8, %v1176_v63, %v1168_v27 }
 0x386   :  { %v1203_v9 = vmul.f32 %v3513_v3, %v1181_v41  ;;  %v1204_v23 = vmul.f32 %v3530_v57, %v1185_v6  ;;  %v1394_v3 = vmul.f32 %v3677_v39, %v3677_v39  ;;  %v1393_v57 = vmul.f32 %v3675_v20, %v3675_v20 }
 0x387   :  { %1467 = vmatmul.mubr.f32.gmra.mrb[18].mxu0 %v1391_v24 }
 0x388   :  { %v1219_v37 = vmul.f32 %v4138_v62, %v1203_v9  ;;  %v1220_v7 = vmul.f32 %v4138_v62, %v1204_v23  ;;  %1719 = vmatprep.mubr.f32.mxu0 %v4140_v58 }
 0x38a   :  { %v3911_v42 = vadd.f32 %v1220_v7, %v1160_v0  ;;  %v3913_v8 = vadd.f32 %v1219_v37, %v1159_v2  ;;  %v1229_v7 = vld [vmem:[%s4089_s6] sm:$0xff] }
 0x38c   :  { %1377 = vmatprep.mubr.f32.mxu1 %v3911_v42  ;;  %v1396_v60 = vmul.f32 %v3911_v42, %v3911_v42  ;;  %v1395_v51 = vmul.f32 %v3913_v8, %v3913_v8 }
 0x38d   :  { %1378 = vmatmul.mubr.f32.gmra.mrb[14].mxu1 %v3913_v8 }
 0x38e   :  { %1536 = vmatprep.mubr.f32.mxu1 %v1394_v3 }
 0x391   :  { %1537 = vmatmul.mubr.f32.vlgmr.msra.gmra.mrb[16].mxu1 %v1393_v57 }
 0x392   :  { %1541 = vmatprep.mubr.f32.mxu1 %v1396_v60 }
 0x395   :  { %1542 = vmatmul.mubr.f32.gmra.mrb[18].mxu1 %v1395_v51  ;;  %v1231_v51 = vld [vmem:[%s4090_s7] sm:$0xff] }
 0x396   :  { %1793 = vmatprep.mubr.f32.mxu1 %v4140_v58  ;;  %v1230_v58 = vld [vmem:[%s4089_s6 + $0x8] sm:$0xff] }
 0x406   :  { %v2334_v62 = vpop.f32.mrb[12].mxu0 }
 0x407   :  { %v2335_v13 = vpop.f32.mrb[13].mxu0 }
 0x408   :  { %v2336_v17 = vadd.f32 %v2335_v13, %v2334_v62  ;;  %v1232_v62 = vld [vmem:[%s4090_s7 + $0x8] sm:$0xff] }
 0x40a   :  { %v1383_v14 = vsel %vm368_vm1, %v2336_v17, 0.0 }
 0x414   :  { %v2372_v61 = vpop.f32.mrb[12].mxu1 }
 0x415   :  { %v2373_v4 = vpop.f32.mrb[13].mxu1 }
 0x416   :  { %v2374_v35 = vadd.f32 %v2373_v4, %v2372_v61 }
 0x418   :  { %v1384_v15 = vsel %vm368_vm1, %v2374_v35, 0.0 }
 0x419   :  { %v1385_v46 = vadd.f32 %v1384_v15, %v1383_v14 }
 0x41b   :  { %v1553_v38 = vmul.f32 0.001953125, %v1385_v46 }
 0x41d   :  { %v1557_v1 = vmul.f32 %v1553_v38, %v1553_v38 }
 0x452   :  { %v2337_v36 = vpop.f32.mrb[14].mxu0 }
 0x453   :  { %v2338_v43 = vpop.f32.mrb[15].mxu0 }
 0x454   :  { %v2339_v26 = vadd.f32 %v2338_v43, %v2337_v36 }
 0x456   :  { %v2410_v56 = vpop.f32.mrb[16].mxu0  ;;  %v1386_v30 = vsel %vm368_vm1, %v2339_v26, 0.0 }
 0x457   :  { %v2411_v47 = vpop.f32.mrb[17].mxu0 }
 0x458   :  { %v2412_v54 = vadd.f32 %v2411_v47, %v2410_v56 }
 0x45a   :  { %v2413_v49 = vpop.f32.mrb[18].mxu0  ;;  %v1547_v27 = vsel %vm368_vm1, %v2412_v54, 0.0 }
 0x45b   :  { %v2414_v34 = vpop.f32.mrb[19].mxu0 }
 0x45c   :  { %v2415_v40 = vadd.f32 %v2414_v34, %v2413_v49 }
 0x45e   :  { %v1550_v5 = vsel %vm368_vm1, %v2415_v40, 0.0 }
 0x460   :  { %v2375_v48 = vpop.f32.mrb[14].mxu1 }
 0x461   :  { %v2376_v59 = vpop.f32.mrb[15].mxu1 }
 0x462   :  { %v2377_v18 = vadd.f32 %v2376_v59, %v2375_v48 }
 0x464   :  { %v1387_v10 = vsel %vm368_vm1, %v2377_v18, 0.0  ;;  %v2448_v19 = vpop.f32.mrb[16].mxu1 }
 0x465   :  { %v1388_v16 = vadd.f32 %v1387_v10, %v1386_v30  ;;  %v2449_v28 = vpop.f32.mrb[17].mxu1 }
 0x466   :  { %v2450_v44 = vadd.f32 %v2449_v28, %v2448_v19 }
 0x467   :  { %v1554_v11 = vmul.f32 0.001953125, %v1388_v16 }
 0x468   :  { %v1548_v25 = vsel %vm368_vm1, %v2450_v44, 0.0  ;;  %v2451_v55 = vpop.f32.mrb[18].mxu1 }
 0x469   :  { %v1549_v12 = vadd.f32 %v1548_v25, %v1547_v27  ;;  %v2452_v45 = vpop.f32.mrb[19].mxu1  ;;  %v1558_v6 = vmul.f32 %v1554_v11, %v1554_v11 }
 0x46a   :  { %v2453_v31 = vadd.f32 %v2452_v45, %v2451_v55 }
 0x46b   :  { %v1555_v33 = vmul.f32 0.001953125, %v1549_v12 }
 0x46c   :  { %v1551_v32 = vsel %vm368_vm1, %v2453_v31, 0.0 }
 0x46d   :  { %v1559_v63 = vsub.f32 %v1555_v33, %v1557_v1  ;;  %v1552_v41 = vadd.f32 %v1551_v32, %v1550_v5 }
 0x46f   :  { %v1561_v24 = vmax.f32 %v1559_v63, 0.0  ;;  %v1556_v50 = vmul.f32 0.001953125, %v1552_v41 }
 0x471   :  { %v1563_v52 = vadd.f32 1e-05, %v1561_v24  ;;  %v1560_v9 = vsub.f32 %v1556_v50, %v1558_v6 }
 0x473   :  { %2835 = vrsqrt.f32 %v1563_v52  ;;  %v1562_v23 = vmax.f32 %v1560_v9, 0.0 }
 0x475   :  { %v1564_v37 = vadd.f32 1e-05, %v1562_v23 }
 0x477   :  { %2837 = vrsqrt.f32 %v1564_v37 }
 0x47d   :  { %v2836_v0 = vpop.eup %2835 }
 0x47e   :  { %v1567_v2 = vmul.f32 %v2836_v0, %v1229_v7 }
 0x480   :  { %1575 = vperm.xlu0 %2829, %v1567_v2   ;;  %v1569_v3 = vmul.f32 %v1567_v2, %v1553_v38 }
 0x481   :  { %v2838_v57 = vpop.eup %2837 }
 0x482   :  { %v1568_v60 = vmul.f32 %v2838_v57, %v1230_v58  ;;  %v1571_v17 = vsub.f32 %v1231_v51, %v1569_v3 }
 0x484   :  { %1580 = vperm.xlu1 %2830, %v1568_v60   ;;  %v1570_v13 = vmul.f32 %v1568_v60, %v1554_v11 }
 0x486   :  { %v1572_v61 = vsub.f32 %v1232_v62, %v1570_v13 }
 0x488   :  { %1593 = vperm.xlu1 %2830, %v1571_v17   ;;  %1598 = vperm.xlu0 %2829, %v1572_v61  }
 0x4ff   :  { %v1576_v4 = vpop.permute.xlu0 %1575 }
 0x500   :  { %v1583_v14 = vmul.f32 %v1576_v4, %v3633_v53  ;;  %v1584_v15 = vmul.f32 %v1576_v4, %v3635_v22  ;;  %v1587_v46 = vmul.f32 %v1576_v4, %v3675_v20  ;;  %v1588_v36 = vmul.f32 %v1576_v4, %v3677_v39  ;;  %v1649_v4 = vld [vmem:[%s4091_s8] sm:$0xff] }
 0x503   :  { %v1581_v35 = vpop.permute.xlu1 %1580 }
 0x504   :  { %v1585_v43 = vmul.f32 %v1581_v35, %v3873_v21  ;;  %v1586_v26 = vmul.f32 %v1581_v35, %v3871_v29  ;;  %v1589_v56 = vmul.f32 %v1581_v35, %v3913_v8  ;;  %v1590_v47 = vmul.f32 %v1581_v35, %v3911_v42  ;;  %v1650_v35 = vld [vmem:[%s4091_s8 + $0x8] sm:$0xff] }
 0x507   :  { %v1594_v54 = vpop.permute.xlu1 %1593  ;;  %v1599_v49 = vpop.permute.xlu0 %1598 }
 0x508   :  { %v1601_v34 = vadd.f32 %v1594_v54, %v1583_v14  ;;  %v1602_v40 = vadd.f32 %v1594_v54, %v1584_v15  ;;  %v1605_v48 = vadd.f32 %v1594_v54, %v1587_v46  ;;  %v1606_v53 = vadd.f32 %v1594_v54, %v1588_v36 }
 0x509   :  { %v1603_v59 = vadd.f32 %v1599_v49, %v1585_v43  ;;  %v1604_v22 = vadd.f32 %v1599_v49, %v1586_v26  ;;  %v1607_v18 = vadd.f32 %v1599_v49, %v1589_v56  ;;  %v1608_v20 = vadd.f32 %v1599_v49, %v1590_v47 }
 0x50a   :  { %v1609_v30 = vadd.f32 3.0, %v1601_v34  ;;  %v1610_v39 = vadd.f32 3.0, %v1602_v40  ;;  %v1613_v10 = vadd.f32 3.0, %v1605_v48  ;;  %v1614_v21 = vadd.f32 3.0, %v1606_v53 }
 0x50b   :  { %v1611_v19 = vadd.f32 3.0, %v1603_v59  ;;  %v1612_v29 = vadd.f32 3.0, %v1604_v22  ;;  %v1615_v16 = vadd.f32 3.0, %v1607_v18  ;;  %v1616_v8 = vadd.f32 3.0, %v1608_v20 }
 0x50c   :  { %v1617_v28 = vmax.f32 %v1609_v30, 0.0  ;;  %v1618_v42 = vmax.f32 %v1610_v39, 0.0  ;;  %v1621_v44 = vmax.f32 %v1613_v10, 0.0  ;;  %v1622_v38 = vmax.f32 %v1614_v21, 0.0 }
 0x50d   :  { %v1619_v27 = vmax.f32 %v1611_v19, 0.0  ;;  %v1620_v25 = vmax.f32 %v1612_v29, 0.0  ;;  %v1623_v55 = vmax.f32 %v1615_v16, 0.0  ;;  %v1624_v12 = vmax.f32 %v1616_v8, 0.0 }
 0x50e   :  { %v1625_v45 = vmin.f32 %v1617_v28, 6.0  ;;  %v1629_v31 = vmin.f32 %v1621_v44, 6.0  ;;  %v1626_v1 = vmin.f32 %v1618_v42, 6.0  ;;  %v1630_v11 = vmin.f32 %v1622_v38, 6.0 }
 0x50f   :  { %v1627_v33 = vmin.f32 %v1619_v27, 6.0  ;;  %v1631_v5 = vmin.f32 %v1623_v55, 6.0  ;;  %v1628_v32 = vmin.f32 %v1620_v25, 6.0  ;;  %v1632_v63 = vmin.f32 %v1624_v12, 6.0  ;;  %v1800_v12 = vld [vmem:[%s4092_s9] sm:$0xff]  ;;  %s2888_s9 = smov [#allocation2]  }
 0x510   :  { %v1633_v41 = vmul.f32 %v1625_v45, %v1601_v34  ;;  %v1637_v6 = vmul.f32 %v1629_v31, %v1605_v48  ;;  %v1634_v24 = vmul.f32 %v1626_v1, %v1602_v40  ;;  %v1638_v50 = vmul.f32 %v1630_v11, %v1606_v53  ;;  %v1801_v1 = vld [vmem:[%s4093_s10] sm:$0xff]  ;;  %s2133_s17 = sshll.u32 %s2888_s9, 4  ;;  %s2134_s17 = int_to_ptr.vmem [resolvable:$true] %s2133_s17 }
 0x511   :  { %v1635_v52 = vmul.f32 %v1627_v33, %v1603_v59  ;;  %v1639_v9 = vmul.f32 %v1631_v5, %v1607_v18  ;;  %v1636_v23 = vmul.f32 %v1628_v32, %v1604_v22  ;;  %v1640_v37 = vmul.f32 %v1632_v63, %v1608_v20  ;;  %s2845_s24 = scalar_lea.vmem %s2134_s17, 512  ;;  %p2850_p1 = scmp.lt.s32.totalorder %s2134_s17, %s2134_s17 }
 0x512   :  { %v1641_v7 = vmul.f32 0.16666667, %v1633_v41  ;;  %v1645_v0 = vmul.f32 0.16666667, %v1637_v6  ;;  %v1642_v2 = vmul.f32 0.16666667, %v1634_v24  ;;  %p2846_p0 = scmp.ne.s32.totalorder %s2134_s17, %s2845_s24  ;;  %p2851_p2 = scmp.lt.s32.totalorder %s2845_s24, %s2845_s24 }
 0x513   :  { %v1643_v58 = vmul.f32 0.16666667, %v1635_v52  ;;  %v1647_v3 = vmul.f32 0.16666667, %v1639_v9  ;;  %v1644_v57 = vmul.f32 0.16666667, %v1636_v23 }
 0x514   :  { %v1646_v60 = vmul.f32 0.16666667, %v1638_v50  ;;  %v1648_v51 = vmul.f32 0.16666667, %v1640_v37  ;;  %v4141_v14 = vmov 1.0|1.0   ;;  %p2852_p3 = por %p2851_p2, %p2850_p1 }
 0x515   :  { %v2722_v62 = vpack.c.bf16 %v1644_v57, %v1642_v2  ;;  %v2724_v13 = vpack.c.bf16 %v1643_v58, %v1641_v7  ;;  %v2728_v17 = vpack.c.bf16 %v1647_v3, %v1645_v0  ;;  %v2841_v37 = vld [vmem:[%s4083_s0] sm:$0xff]  ;;  %v2842_v0 = vld [vmem:[%s4083_s0 + $0x8] sm:$0xff]  ;;  %v2843_v58 = vld [vmem:[%s4083_s0 + $0x10] sm:$0xff] }
 0x516   :  { %v2726_v61 = vpack.c.bf16 %v1648_v51, %v1646_v60  ;;  %v2844_v57 = vld [vmem:[%s4083_s0 + $0x18] sm:$0xff]  ;;  %p2853_p4 = pnand %p2852_p3, %p2846_p0 }
 0x517   :  { %2723 = vmatprep.subr.bf16.mxu0 %v2722_v62 }
 0x518   :  { %2727 = vmatprep.subr.bf16.mxu1 %v2726_v61  ;;  %2725 = vmatpush1.bf16.msra.mxu0 %v2724_v13 }
 0x519   :  { %2729 = vmatpush1.bf16.msra.mxu1 %v2728_v17  ;;  %2730 = vmatprep.subr.bf16.mxu0 %v4141_v14 }
 0x51a   :  { %2746 = vmatprep.subr.bf16.mxu1 %v4141_v14 }
 0x51b   :  { %2148 = vmatmul.mubr.msk.f32.vlgmr.msra.gmra.mrb[20].mxu0 %vm1651_vm10, %v1649_v4 }
 0x51c   :  { %2149 = vmatmul.mubr.msk.f32.vlgmr.msra.gmra.mrb[20].mxu1 %vm1651_vm10, %v1650_v35  ;;  %2731 = vmatpush3.bf16.msra.mxu0 %v4141_v14 }
 0x51d   :  { %2747 = vmatpush3.bf16.msra.mxu1 %v4141_v14  ;;  %2732 = vmatprep.subr.bf16.mxu0 %v4141_v14 }
 0x51e   :  { %2748 = vmatprep.subr.bf16.mxu1 %v4141_v14 }
 0x520   :  { %2733 = vmatpush3.bf16.msra.mxu0 %v4141_v14 }
 0x521   :  { %2749 = vmatpush3.bf16.msra.mxu1 %v4141_v14  ;;  %2734 = vmatprep.subr.bf16.mxu0 %v4141_v14 }
 0x522   :  { %2750 = vmatprep.subr.bf16.mxu1 %v4141_v14 }
 0x524   :  { %2735 = vmatpush3.bf16.msra.mxu0 %v4141_v14 }
 0x525   :  { %2751 = vmatpush3.bf16.msra.mxu1 %v4141_v14  ;;  %2736 = vmatprep.subr.bf16.mxu0 %v4141_v14 }
 0x526   :  { %2752 = vmatprep.subr.bf16.mxu1 %v4141_v14 }
 0x528   :  { %2737 = vmatpush3.bf16.msra.mxu0 %v4141_v14 }
 0x529   :  { %2753 = vmatpush3.bf16.msra.mxu1 %v4141_v14  ;;  %2738 = vmatprep.subr.bf16.mxu0 %v4141_v14 }
 0x52a   :  { %2754 = vmatprep.subr.bf16.mxu1 %v4141_v14 }
 0x52c   :  { %2739 = vmatpush3.bf16.msra.mxu0 %v4141_v14 }
 0x52d   :  { %2755 = vmatpush3.bf16.msra.mxu1 %v4141_v14  ;;  %2740 = vmatprep.subr.bf16.mxu0 %v4141_v14 }
 0x52e   :  { %2756 = vmatprep.subr.bf16.mxu1 %v4141_v14 }
 0x530   :  { %2741 = vmatpush3.bf16.msra.mxu0 %v4141_v14 }
 0x531   :  { %2757 = vmatpush3.bf16.msra.mxu1 %v4141_v14  ;;  %2742 = vmatprep.subr.bf16.mxu0 %v4141_v14 }
 0x532   :  { %2758 = vmatprep.subr.bf16.mxu1 %v4141_v14 }
 0x534   :  { %2743 = vmatpush3.bf16.msra.mxu0 %v4141_v14 }
 0x535   :  { %2759 = vmatpush3.bf16.msra.mxu1 %v4141_v14  ;;  %2744 = vmatprep.subr.bf16.mxu0 %v4141_v14 }
 0x536   :  { %2760 = vmatprep.subr.bf16.mxu1 %v4141_v14 }
 0x538   :  { %2745 = vmatpush3.bf16.msra.mxu0 %v4141_v14 }
 0x539   :  { %2761 = vmatpush3.bf16.msra.mxu1 %v4141_v14  ;;  %2762 = vmatprep.subr.bf16.mxu0 %v4141_v14 }
 0x53a   :  { %2778 = vmatprep.subr.bf16.mxu1 %v4141_v14 }
 0x5ee   :  { %v3994_v15 = vpop.f32.mrb[20].mxu0 }
 0x5ef   :  { %v3996_v46 = vpop.f32.mrb[20].mxu1  ;;  %v3998_v36 = vpop.f32.mrb[21].mxu0  ;;  %v1945_v47 = vmul.f32 %v3994_v15, %v3994_v15 }
 0x5f0   :  { %v1946_v43 = vmul.f32 %v3998_v36, %v3998_v36  ;;  %v4002_v26 = vpop.f32.mrb[21].mxu1  ;;  %1866 = vmatprep.mubr.f32.mxu0 %v3998_v36  ;;  %v1947_v54 = vmul.f32 %v3996_v46, %v3996_v46 }
 0x5f1   :  { %v1948_v56 = vmul.f32 %v4002_v26, %v4002_v26  ;;  %1936 = vmatprep.mubr.f32.mxu1 %v4002_v26  ;;  %1867 = vmatmul.mubr.f32.vlgmr.msra.gmra.mrb[22].mxu0 %v3994_v15 }
 0x5f2   :  { %1937 = vmatmul.mubr.f32.vlgmr.msra.gmra.mrb[22].mxu1 %v3996_v46  ;;  %2763 = vmatpush3.bf16.msra.mxu0 %v4141_v14 }
 0x5f3   :  { %2779 = vmatpush3.bf16.msra.mxu1 %v4141_v14  ;;  %2764 = vmatprep.subr.bf16.mxu0 %v4141_v14 }
 0x5f4   :  { %2780 = vmatprep.subr.bf16.mxu1 %v4141_v14  ;;  %2013 = vmatprep.mubr.f32.mxu0 %v1946_v43 }
 0x5f5   :  { %2083 = vmatprep.mubr.f32.mxu1 %v1948_v56 }
 0x5f6   :  { %2765 = vmatpush3.bf16.msra.mxu0 %v4141_v14 }
 0x5f7   :  { %2781 = vmatpush3.bf16.msra.mxu1 %v4141_v14  ;;  %2766 = vmatprep.subr.bf16.mxu0 %v4141_v14 }
 0x5f8   :  { %2782 = vmatprep.subr.bf16.mxu1 %v4141_v14 }
 0x5fa   :  { %2767 = vmatpush3.bf16.msra.mxu0 %v4141_v14 }
 0x5fb   :  { %2783 = vmatpush3.bf16.msra.mxu1 %v4141_v14  ;;  %2768 = vmatprep.subr.bf16.mxu0 %v4141_v14 }
 0x5fc   :  { %2784 = vmatprep.subr.bf16.mxu1 %v4141_v14 }
 0x5fe   :  { %2769 = vmatpush3.bf16.msra.mxu0 %v4141_v14 }
 0x5ff   :  { %2785 = vmatpush3.bf16.msra.mxu1 %v4141_v14  ;;  %2770 = vmatprep.subr.bf16.mxu0 %v4141_v14 }
 0x600   :  { %2786 = vmatprep.subr.bf16.mxu1 %v4141_v14 }
 0x602   :  { %2771 = vmatpush3.bf16.msra.mxu0 %v4141_v14 }
 0x603   :  { %2787 = vmatpush3.bf16.msra.mxu1 %v4141_v14  ;;  %2772 = vmatprep.subr.bf16.mxu0 %v4141_v14 }
 0x604   :  { %2788 = vmatprep.subr.bf16.mxu1 %v4141_v14 }
 0x606   :  { %2773 = vmatpush3.bf16.msra.mxu0 %v4141_v14 }
 0x607   :  { %2789 = vmatpush3.bf16.msra.mxu1 %v4141_v14  ;;  %2774 = vmatprep.subr.bf16.mxu0 %v4141_v14 }
 0x608   :  { %2790 = vmatprep.subr.bf16.mxu1 %v4141_v14 }
 0x60a   :  { %2775 = vmatpush3.bf16.msra.mxu0 %v4141_v14 }
 0x60b   :  { %2791 = vmatpush3.bf16.msra.mxu1 %v4141_v14  ;;  %2776 = vmatprep.subr.bf16.mxu0 %v4141_v14 }
 0x60c   :  { %2792 = vmatprep.subr.bf16.mxu1 %v4141_v14 }
 0x60e   :  { %2777 = vmatpush3.bf16.msra.mxu0 %v4141_v14 }
 0x60f   :  { %2793 = vmatpush3.bf16.msra.mxu1 %v4141_v14 }
 0x611   :  { %2014 = vmatmul.mubr.f32.vlgmr.msra.gmra.mrb[24].mxu0 %v1945_v47 }
 0x612   :  { %2084 = vmatmul.mubr.f32.vlgmr.msra.gmra.mrb[24].mxu1 %v1947_v54 }
 0x6c4   :  { %v2486_v49 = vpop.f32.mrb[22].mxu0 }
 0x6c5   :  { %v2521_v34 = vpop.f32.mrb[22].mxu1  ;;  %v2487_v40 = vpop.f32.mrb[23].mxu0 }
 0x6c6   :  { %v2488_v48 = vadd.f32 %v2487_v40, %v2486_v49  ;;  %v2522_v53 = vpop.f32.mrb[23].mxu1 }
 0x6c7   :  { %v2523_v59 = vadd.f32 %v2522_v53, %v2521_v34 }
 0x6c8   :  { %v1942_v22 = vsel %vm368_vm1, %v2488_v48, 0.0 }
 0x6c9   :  { %v1943_v18 = vsel %vm368_vm1, %v2523_v59, 0.0 }
 0x6ca   :  { %v1944_v20 = vadd.f32 %v1943_v18, %v1942_v22 }
 0x6cc   :  { %v2092_v16 = vmul.f32 0.001953125, %v1944_v20 }
 0x6ce   :  { %v2094_v44 = vmul.f32 %v2092_v16, %v2092_v16 }
 0x6e4   :  { %v2556_v30 = vpop.f32.mrb[24].mxu0 }
 0x6e5   :  { %v2591_v39 = vpop.f32.mrb[24].mxu1  ;;  %v2557_v10 = vpop.f32.mrb[25].mxu0 }
 0x6e6   :  { %v2558_v21 = vadd.f32 %v2557_v10, %v2556_v30  ;;  %v2592_v19 = vpop.f32.mrb[25].mxu1 }
 0x6e7   :  { %v2593_v29 = vadd.f32 %v2592_v19, %v2591_v39 }
 0x6e8   :  { %v2089_v8 = vsel %vm368_vm1, %v2558_v21, 0.0 }
 0x6e9   :  { %v2090_v28 = vsel %vm368_vm1, %v2593_v29, 0.0 }
 0x6ea   :  { %v2091_v42 = vadd.f32 %v2090_v28, %v2089_v8 }
 0x6ec   :  { %v2093_v38 = vmul.f32 0.001953125, %v2091_v42 }
 0x6ee   :  { %v2095_v27 = vsub.f32 %v2093_v38, %v2094_v44 }
 0x6f0   :  { %v2096_v25 = vmax.f32 %v2095_v27, 0.0 }
 0x6f2   :  { %v2097_v55 = vadd.f32 1e-05, %v2096_v25 }
 0x6f4   :  { %2839 = vrsqrt.f32 %v2097_v55 }
 0x6fe   :  { %v2840_v45 = vpop.eup %2839 }
 0x6ff   :  { %v2099_v31 = vmul.f32 %v2840_v45, %v1800_v12 }
 0x701   :  { %2104 = vperm.xlu1 %2830, %v2099_v31   ;;  %v2100_v11 = vmul.f32 %v2099_v31, %v2092_v16 }
 0x703   :  { %v2101_v33 = vsub.f32 %v1801_v1, %v2100_v11 }
 0x705   :  { %2113 = vperm.xlu0 %2829, %v2101_v33  }
 0x780   :  { %v2105_v5 = vpop.permute.xlu1 %2104 }
 0x781   :  { %v2107_v32 = vmul.f32 %v2105_v5, %v3994_v15  ;;  %v2108_v63 = vmul.f32 %v2105_v5, %v3998_v36  ;;  %v2109_v41 = vmul.f32 %v2105_v5, %v3996_v46  ;;  %v2110_v6 = vmul.f32 %v2105_v5, %v4002_v26 }
 0x784   :  { %v2114_v24 = vpop.permute.xlu0 %2113 }
 0x785   :  { %v2116_v50 = vadd.f32 %v2114_v24, %v2107_v32  ;;  %v2117_v52 = vadd.f32 %v2114_v24, %v2108_v63  ;;  %v2118_v9 = vadd.f32 %v2114_v24, %v2109_v41  ;;  %v2119_v23 = vadd.f32 %v2114_v24, %v2110_v6 }
 0x787   :  { %v2120_v7 = vadd.f32 %v2841_v37, %v2116_v50  ;;  %v2121_v2 = vadd.f32 %v2842_v0, %v2117_v52  ;;  %v2122_v3 = vadd.f32 %v2843_v58, %v2118_v9  ;;  %v2123_v60 = vadd.f32 %v2844_v57, %v2119_v23 }
 0x789   :  { %2124 = vst [vmem:[#allocation2] sm:$0xff] %v2120_v7  ;;  %2125 = vst [vmem:[#allocation2 + $0x8] sm:$0xff] %v2121_v2 }
 0x78a   :  { %2126 = vst [vmem:[#allocation2 + $0x10] sm:$0xff] %v2122_v3  ;;  %2127 = vst [vmem:[#allocation2 + $0x18] sm:$0xff] %v2123_v60 }
 0x78b   :  { %2856 = shalt.err (!%p2853_p4)
}
 0x78c   :  { %s2857_s26 = scalar_lea.hbm %s4094_s11, 512 }
 0x78d   :  { %p2858_p5 = scmp.ne.s32.totalorder %s4094_s11, %s2857_s26  ;;  %p2861_p6 = scmp.lt.u32.totalorder %s2857_s26, %s4094_s11 }
 0x78f   :  { %p2863_p7 = pnand %p2861_p6, %p2858_p5 }
 0x791   :  { %2866 = shalt.err (!%p2863_p7)
}
 0x792   :  { %s2889_s30 = smov 256  }
 0x793   :  { %2139 = dma.vmem_to_hbm [thread:$0]  %s2134_s17, 512, %s4094_s11, [#allocation3], %s2889_s30, %s2889_s30, %s2881_s3  }
 0x794   :  { %2867 = dma.done.wait [#allocation3], 512  }
 0x795   :  { %2868 = vsyncadd [#allocation3], 4294966784 }
 0x796   :  { %2143 = vsyncpa [#allocation3], 1 }

</bundles_post_ra>
